<compile_context>
chip_gen: v7x
topology: tpu7x:2x2x1
jax: 0.10.0
libtpu: 0.0.40
codegen_flags: <defaults>
</compile_context>

<pallas_src>
import jax
import jax.numpy as jnp
import numpy as np
from jax.experimental import pallas as pl
from jax.experimental.pallas import tpu as pltpu

_EPS = 1e-6   # matches torch.nn.LayerNorm(stock_num, eps=1e-06)


# ---------------------------------------------------------------------------
# Fused kernel
# ---------------------------------------------------------------------------
def _mlp_fused_kernel(x_ref, w1_ref, b1_ref, w2_ref, b2_ref,
                      avg_ref, g_ref, bt_ref, b3_ref, b4_ref,
                      w3_hbm, w4_hbm,
                      o_ref,
                      w3_buf, w4_buf, sem):
    """Fused MLP forward.

    Row layout of x / intermediates: stock-major, row i = s*B + b.
      x_ref   : (S*B, F)
      w1, b1  : (F, H0), (1, H0)        f32
      w2, b2  : (H0, H1), (1, H1)       f32
      avg_ref : (S*B, S*B)  averaging matrix, avg[i, j] = 1/S iff i%B == j%B
      g, bt   : (S*B, 1)    LayerNorm gamma/beta expanded per row (= gamma[s])
      b3, b4  : (1, H2), (1, H3)        f32
      w3_hbm  : (S*H1, H2)  bf16, in HBM (manual DMA)
      w4_hbm  : (H2, H3)    bf16, in HBM (manual DMA)
      o_ref   : (B, H3)     f32, lane-dense output
      w3_buf, w4_buf : VMEM landing buffers for the big weights
      sem     : DMA semaphores (2,)
    """
    S_B = x_ref.shape[0]
    B = o_ref.shape[0]
    S = S_B // B

    # Start the big-weight DMAs immediately so they overlap with the
    # linear1 / linear2 / LayerNorm compute below.
    c3 = pltpu.make_async_copy(w3_hbm, w3_buf, sem.at[0])
    c4 = pltpu.make_async_copy(w4_hbm, w4_buf, sem.at[1])
    c3.start()
    c4.start()

    # ---- StockRepresent: linear1 -> ReLU -> linear2 (row-wise, f32) --------
    h = jnp.dot(x_ref[...], w1_ref[...], preferred_element_type=jnp.float32)
    h = jnp.maximum(h + b1_ref[...], 0.0)
    y = jnp.dot(h, w2_ref[...], preferred_element_type=jnp.float32) + b2_ref[...]

    # ---- LayerNorm over the stock axis (rows sharing the same batch b) -----
    # Two INDEPENDENT averaging matmuls; var = E[y^2] - mean^2 (biased, like
    # torch.nn.LayerNorm).  H1 stays in lanes: no transpose anywhere.
    mean = jnp.dot(avg_ref[...], y, preferred_element_type=jnp.float32)
    ey2 = jnp.dot(avg_ref[...], y * y, preferred_element_type=jnp.float32)
    var = ey2 - mean * mean
    yn = (y - mean) * jax.lax.rsqrt(var + _EPS) * g_ref[...] + bt_ref[...]
    z = jnp.maximum(yn, 0.0)                       # ReLU before linear3

    # ---- Repack stock-major rows (S*B, H1) -> (B, S*H1) ---------------------
    # Row b of zcat is [z[0*B+b], z[1*B+b], ..., z[(S-1)*B+b]] concatenated
    # along lanes -> column index s*H1 + h matches w3's original row order.
    zcat = jnp.concatenate([z[s * B:(s + 1) * B, :] for s in range(S)], axis=1)

    # ---- Head: linear3 -> ReLU -> linear4 (bf16 operands, f32 accumulate) ---
    c3.wait()
    a = jnp.dot(zcat.astype(jnp.bfloat16), w3_buf[...],
                preferred_element_type=jnp.float32)
    a = jnp.maximum(a + b3_ref[...], 0.0)
    c4.wait()
    o_ref[...] = (jnp.dot(a.astype(jnp.bfloat16), w4_buf[...],
                          preferred_element_type=jnp.float32) + b4_ref[...])


# ---------------------------------------------------------------------------
# Wrapper = the MLP forward pass (one pallas_call)
# ---------------------------------------------------------------------------
def mlp_forward(x, params):
    B, S, F = x.shape
    (w1, b1, w2, b2, _gamma, _beta, avg, g_col, bt_col, w3, b3, w4, b4) = params
    H3 = w4.shape[1]

    # Stock-major row layout: row i = s*B + b.  Keeps each stock's B rows
    # contiguous so the in-kernel repack to (B, S*H1) is a handful of cheap
    # slices.  (The transpose is on a 240-byte tensor: negligible.)
    xs = jnp.transpose(x, (1, 0, 2)).reshape(S * B, F)

    vmem = pl.BlockSpec(memory_space=pltpu.MemorySpace.VMEM)
    hbm = pl.BlockSpec(memory_space=pl.ANY)      # manual DMA inside the kernel
    return pl.pallas_call(
        _mlp_fused_kernel,
        out_shape=jax.ShapeDtypeStruct((B, H3), jnp.float32),
        in_specs=[vmem] * 10 + [hbm, hbm],
        out_specs=vmem,
        scratch_shapes=[
            pltpu.VMEM(w3.shape, w3.dtype),      # w3 landing buffer (bf16)
            pltpu.VMEM(w4.shape, w4.dtype),      # w4 landing buffer (bf16)
            pltpu.SemaphoreType.DMA((2,)),
        ],
    )(xs, w1, b1, w2, b2, avg, g_col, bt_col, b3, b4, w3, w4)


# ---------------------------------------------------------------------------
# Deterministic parameter init (PyTorch-style uniform(-1/sqrt(fan_in), +...)).
# Big weights (w3, w4) stored in bf16; all kernel constants precomputed here
# so the per-call wrapper does no extra HLO work.
# ---------------------------------------------------------------------------
def init_params(key, batch, stock_num, feat, hidden):
    H0, H1, H2, H3 = hidden
    ks = jax.random.split(key, 8)

    def lin(kw, kb, fan_in, fan_out, w_dtype=jnp.float32):
        bound = 1.0 / np.sqrt(fan_in)
        w = jax.random.uniform(kw, (fan_in, fan_out), jnp.float32, -bound, bound)
        b = jax.random.uniform(kb, (1, fan_out), jnp.float32, -bound, bound)
        return w.astype(w_dtype), b

    w1, b1 = lin(ks[0], ks[1], feat, H0)
    w2, b2 = lin(ks[2], ks[3], H0, H1)
    gamma = jnp.ones((stock_num,), jnp.float32)
    beta = jnp.zeros((stock_num,), jnp.float32)
    w3, b3 = lin(ks[4], ks[5], stock_num * H1, H2, jnp.bfloat16)
    w4, b4 = lin(ks[6], ks[7], H2, H3, jnp.bfloat16)

    # Kernel constants (stock-major row layout, row i = s*B + b):
    sb = stock_num * batch
    idx = jnp.arange(sb)
    avg = jnp.where((idx[:, None] % batch) == (idx[None, :] % batch),
                    jnp.float32(1.0 / stock_num), jnp.float32(0.0))
    g_col = jnp.repeat(gamma, batch).reshape(sb, 1).astype(jnp.float32)
    bt_col = jnp.repeat(beta, batch).reshape(sb, 1).astype(jnp.float32)

    return (w1, b1, w2, b2, gamma, beta, avg, g_col, bt_col, w3, b3, w4, b4)


# ---------------------------------------------------------------------------
# Pure-JAX reference (mirrors the PyTorch forward, f32 math) for correctness
# ---------------------------------------------------------------------------
def mlp_reference(x, params):
    B, S, F = x.shape
    w1, b1, w2, b2, gamma, beta, _, _, _, w3, b3, w4, b4 = params
    h = jnp.maximum(x.reshape(-1, F) @ w1 + b1, 0.0)
    y = (h @ w2 + b2).reshape(B, S, -1)
    yt = jnp.transpose(y, (0, 2, 1))
    mean = jnp.mean(yt, axis=-1, keepdims=True)
    var = jnp.mean((yt - mean) ** 2, axis=-1, keepdims=True)
    yn = (yt - mean) / jnp.sqrt(var + _EPS) * gamma + beta
    z = jnp.transpose(yn, (0, 2, 1)).reshape(B, -1)
    a = jnp.maximum(jnp.maximum(z, 0.0) @ w3.astype(jnp.float32) + b3, 0.0)
    return a @ w4.astype(jnp.float32) + b4


if __name__ == "__main__":
    B, S, F = 3, 5, 4                      # matches torch.rand(3, 5, 4), obs_shape=(5, 4)
    hidden = [512, 10, 2000, 128]          # default hidden_size_list

    key = jax.random.PRNGKey(0)
    kx, kp = jax.random.split(key)
    x = jax.random.uniform(kx, (B, S, F), jnp.float32)
    params = init_params(kp, B, S, F, hidden)

    out = jax.jit(mlp_forward)(x, params)
    out = jax.block_until_ready(out)

    ref = mlp_reference(x, params)
    assert out.shape == (B, hidden[3]), out.shape
    # Tolerance accommodates bf16 storage of w3/w4 (relative error ~1e-3).
    np.testing.assert_allclose(np.asarray(out), np.asarray(ref), rtol=2e-2, atol=2e-3)

    print("KERNEL_OK")
</pallas_src>

<mosaic_0001>
module attributes {stable_mosaic.version = 11 : i64} {
  func.func @_mlp_fused_kernel(%arg0: memref<15x4xf32, #tpu.memory_space<vmem>>, %arg1: memref<4x512xf32, #tpu.memory_space<vmem>>, %arg2: memref<1x512xf32, #tpu.memory_space<vmem>>, %arg3: memref<512x10xf32, #tpu.memory_space<vmem>>, %arg4: memref<1x10xf32, #tpu.memory_space<vmem>>, %arg5: memref<15x15xf32, #tpu.memory_space<vmem>>, %arg6: memref<15x1xf32, #tpu.memory_space<vmem>>, %arg7: memref<15x1xf32, #tpu.memory_space<vmem>>, %arg8: memref<1x2000xf32, #tpu.memory_space<vmem>>, %arg9: memref<1x128xf32, #tpu.memory_space<vmem>>, %arg10: memref<50x2000xbf16, #tpu.memory_space<any>>, %arg11: memref<2000x128xbf16, #tpu.memory_space<any>>, %arg12: memref<3x128xf32, #tpu.memory_space<vmem>>, %arg13: memref<50x2000xbf16, #tpu.memory_space<vmem>>, %arg14: memref<2000x128xbf16, #tpu.memory_space<vmem>>, %arg15: memref<2x!tpu.dma_semaphore, #tpu.memory_space<semaphore_mem>>) attributes {dimension_semantics = [], scalar_prefetch = 0 : i64, scratch_operands = 3 : i64, tpu.core_type = #tpu.core_type<tc>} {
    %c0_i32 = arith.constant 0 : i32
    %0 = tpu.memref_slice %arg15[%c0_i32] : memref<2x!tpu.dma_semaphore, #tpu.memory_space<semaphore_mem>> -> memref<1x!tpu.dma_semaphore, #tpu.memory_space<semaphore_mem>>
    %1 = tpu.memref_squeeze %0 : memref<1x!tpu.dma_semaphore, #tpu.memory_space<semaphore_mem>> -> memref<!tpu.dma_semaphore, #tpu.memory_space<semaphore_mem>>
    tpu.enqueue_dma source(%arg10 : memref<50x2000xbf16, #tpu.memory_space<any>>) target(%arg13 : memref<50x2000xbf16, #tpu.memory_space<vmem>>) target_semaphore(%1 : memref<!tpu.dma_semaphore, #tpu.memory_space<semaphore_mem>>)
    %c1_i32 = arith.constant 1 : i32
    %2 = tpu.memref_slice %arg15[%c1_i32] : memref<2x!tpu.dma_semaphore, #tpu.memory_space<semaphore_mem>> -> memref<1x!tpu.dma_semaphore, #tpu.memory_space<semaphore_mem>>
    %3 = tpu.memref_squeeze %2 : memref<1x!tpu.dma_semaphore, #tpu.memory_space<semaphore_mem>> -> memref<!tpu.dma_semaphore, #tpu.memory_space<semaphore_mem>>
    tpu.enqueue_dma source(%arg11 : memref<2000x128xbf16, #tpu.memory_space<any>>) target(%arg14 : memref<2000x128xbf16, #tpu.memory_space<vmem>>) target_semaphore(%3 : memref<!tpu.dma_semaphore, #tpu.memory_space<semaphore_mem>>)
    %c0 = arith.constant 0 : index
    %c0_0 = arith.constant 0 : index
    %4 = vector.load %arg0[%c0, %c0_0] : memref<15x4xf32, #tpu.memory_space<vmem>>, vector<15x4xf32>
    %c0_1 = arith.constant 0 : index
    %c0_2 = arith.constant 0 : index
    %5 = vector.load %arg1[%c0_1, %c0_2] : memref<4x512xf32, #tpu.memory_space<vmem>>, vector<4x512xf32>
    %cst = arith.constant dense<0.000000e+00> : vector<15x512xf32>
    %6 = tpu.matmul %4, %5, %cst {dimension_numbers = #tpu.dot_dimension_numbers<[1], [0], [0], [1], [0, 0, 1, 1], [], []>} : vector<15x4xf32>, vector<4x512xf32>, vector<15x512xf32> -> vector<15x512xf32>
    %c0_3 = arith.constant 0 : index
    %c0_4 = arith.constant 0 : index
    %7 = vector.load %arg2[%c0_3, %c0_4] : memref<1x512xf32, #tpu.memory_space<vmem>>, vector<1x512xf32>
    %8 = vector.broadcast %7 : vector<1x512xf32> to vector<15x512xf32>
    %9 = arith.addf %6, %8 : vector<15x512xf32>
    %cst_5 = arith.constant 0.000000e+00 : f32
    %10 = vector.broadcast %cst_5 : f32 to vector<15x512xf32>
    %11 = arith.maximumf %9, %10 : vector<15x512xf32>
    %c0_6 = arith.constant 0 : index
    %c0_7 = arith.constant 0 : index
    %12 = vector.load %arg3[%c0_6, %c0_7] : memref<512x10xf32, #tpu.memory_space<vmem>>, vector<512x10xf32>
    %cst_8 = arith.constant dense<0.000000e+00> : vector<15x10xf32>
    %13 = tpu.matmul %11, %12, %cst_8 {dimension_numbers = #tpu.dot_dimension_numbers<[1], [0], [0], [1], [0, 0, 1, 1], [], []>} : vector<15x512xf32>, vector<512x10xf32>, vector<15x10xf32> -> vector<15x10xf32>
    %c0_9 = arith.constant 0 : index
    %c0_10 = arith.constant 0 : index
    %14 = vector.load %arg4[%c0_9, %c0_10] : memref<1x10xf32, #tpu.memory_space<vmem>>, vector<1x10xf32>
    %15 = vector.broadcast %14 : vector<1x10xf32> to vector<15x10xf32>
    %16 = arith.addf %13, %15 : vector<15x10xf32>
    %c0_11 = arith.constant 0 : index
    %c0_12 = arith.constant 0 : index
    %17 = vector.load %arg5[%c0_11, %c0_12] : memref<15x15xf32, #tpu.memory_space<vmem>>, vector<15x15xf32>
    %cst_13 = arith.constant dense<0.000000e+00> : vector<15x10xf32>
    %18 = tpu.matmul %17, %16, %cst_13 {dimension_numbers = #tpu.dot_dimension_numbers<[1], [0], [0], [1], [0, 0, 1, 1], [], []>} : vector<15x15xf32>, vector<15x10xf32>, vector<15x10xf32> -> vector<15x10xf32>
    %c0_14 = arith.constant 0 : index
    %c0_15 = arith.constant 0 : index
    %19 = vector.load %arg5[%c0_14, %c0_15] : memref<15x15xf32, #tpu.memory_space<vmem>>, vector<15x15xf32>
    %20 = arith.mulf %16, %16 : vector<15x10xf32>
    %cst_16 = arith.constant dense<0.000000e+00> : vector<15x10xf32>
    %21 = tpu.matmul %19, %20, %cst_16 {dimension_numbers = #tpu.dot_dimension_numbers<[1], [0], [0], [1], [0, 0, 1, 1], [], []>} : vector<15x15xf32>, vector<15x10xf32>, vector<15x10xf32> -> vector<15x10xf32>
    %22 = arith.mulf %18, %18 : vector<15x10xf32>
    %23 = arith.subf %21, %22 : vector<15x10xf32>
    %24 = arith.subf %16, %18 : vector<15x10xf32>
    %cst_17 = arith.constant 9.99999997E-7 : f32
    %25 = vector.broadcast %cst_17 : f32 to vector<15x10xf32>
    %26 = arith.addf %23, %25 : vector<15x10xf32>
    %27 = math.rsqrt %26 : vector<15x10xf32>
    %28 = arith.mulf %24, %27 : vector<15x10xf32>
    %c0_18 = arith.constant 0 : index
    %c0_19 = arith.constant 0 : index
    %29 = vector.load %arg6[%c0_18, %c0_19] : memref<15x1xf32, #tpu.memory_space<vmem>>, vector<15x1xf32>
    %30 = vector.broadcast %29 : vector<15x1xf32> to vector<15x10xf32>
    %31 = arith.mulf %28, %30 : vector<15x10xf32>
    %c0_20 = arith.constant 0 : index
    %c0_21 = arith.constant 0 : index
    %32 = vector.load %arg7[%c0_20, %c0_21] : memref<15x1xf32, #tpu.memory_space<vmem>>, vector<15x1xf32>
    %33 = vector.broadcast %32 : vector<15x1xf32> to vector<15x10xf32>
    %34 = arith.addf %31, %33 : vector<15x10xf32>
    %cst_22 = arith.constant 0.000000e+00 : f32
    %35 = vector.broadcast %cst_22 : f32 to vector<15x10xf32>
    %36 = arith.maximumf %34, %35 : vector<15x10xf32>
    %37 = vector.extract_strided_slice %36 {offsets = [0, 0], sizes = [3, 10], strides = [1, 1]} : vector<15x10xf32> to vector<3x10xf32>
    %38 = vector.extract_strided_slice %36 {offsets = [3, 0], sizes = [3, 10], strides = [1, 1]} : vector<15x10xf32> to vector<3x10xf32>
    %39 = vector.extract_strided_slice %36 {offsets = [6, 0], sizes = [3, 10], strides = [1, 1]} : vector<15x10xf32> to vector<3x10xf32>
    %40 = vector.extract_strided_slice %36 {offsets = [9, 0], sizes = [3, 10], strides = [1, 1]} : vector<15x10xf32> to vector<3x10xf32>
    %41 = vector.extract_strided_slice %36 {offsets = [12, 0], sizes = [3, 10], strides = [1, 1]} : vector<15x10xf32> to vector<3x10xf32>
    %42 = tpu.concatenate %37, %38, %39, %40, %41 in 1 : vector<3x10xf32>, vector<3x10xf32>, vector<3x10xf32>, vector<3x10xf32>, vector<3x10xf32> -> vector<3x50xf32>
    %c0_i32_23 = arith.constant 0 : i32
    %43 = tpu.memref_slice %arg15[%c0_i32_23] : memref<2x!tpu.dma_semaphore, #tpu.memory_space<semaphore_mem>> -> memref<1x!tpu.dma_semaphore, #tpu.memory_space<semaphore_mem>>
    %44 = tpu.memref_squeeze %43 : memref<1x!tpu.dma_semaphore, #tpu.memory_space<semaphore_mem>> -> memref<!tpu.dma_semaphore, #tpu.memory_space<semaphore_mem>>
    tpu.wait_dma2 semaphore(%44 : memref<!tpu.dma_semaphore, #tpu.memory_space<semaphore_mem>>) src(%arg10 : memref<50x2000xbf16, #tpu.memory_space<any>>) dst(%arg13 : memref<50x2000xbf16, #tpu.memory_space<vmem>>)
    %45 = arith.truncf %42 : vector<3x50xf32> to vector<3x50xbf16>
    %c0_24 = arith.constant 0 : index
    %c0_25 = arith.constant 0 : index
    %46 = vector.load %arg13[%c0_24, %c0_25] : memref<50x2000xbf16, #tpu.memory_space<vmem>>, vector<50x2000xbf16>
    %cst_26 = arith.constant dense<0.000000e+00> : vector<3x2000xf32>
    %47 = tpu.matmul %45, %46, %cst_26 {dimension_numbers = #tpu.dot_dimension_numbers<[1], [0], [0], [1], [0, 0, 1, 1], [], []>} : vector<3x50xbf16>, vector<50x2000xbf16>, vector<3x2000xf32> -> vector<3x2000xf32>
    %c0_27 = arith.constant 0 : index
    %c0_28 = arith.constant 0 : index
    %48 = vector.load %arg8[%c0_27, %c0_28] : memref<1x2000xf32, #tpu.memory_space<vmem>>, vector<1x2000xf32>
    %49 = vector.broadcast %48 : vector<1x2000xf32> to vector<3x2000xf32>
    %50 = arith.addf %47, %49 : vector<3x2000xf32>
    %cst_29 = arith.constant 0.000000e+00 : f32
    %51 = vector.broadcast %cst_29 : f32 to vector<3x2000xf32>
    %52 = arith.maximumf %50, %51 : vector<3x2000xf32>
    %c1_i32_30 = arith.constant 1 : i32
    %53 = tpu.memref_slice %arg15[%c1_i32_30] : memref<2x!tpu.dma_semaphore, #tpu.memory_space<semaphore_mem>> -> memref<1x!tpu.dma_semaphore, #tpu.memory_space<semaphore_mem>>
    %54 = tpu.memref_squeeze %53 : memref<1x!tpu.dma_semaphore, #tpu.memory_space<semaphore_mem>> -> memref<!tpu.dma_semaphore, #tpu.memory_space<semaphore_mem>>
    tpu.wait_dma2 semaphore(%54 : memref<!tpu.dma_semaphore, #tpu.memory_space<semaphore_mem>>) src(%arg11 : memref<2000x128xbf16, #tpu.memory_space<any>>) dst(%arg14 : memref<2000x128xbf16, #tpu.memory_space<vmem>>)
    %55 = arith.truncf %52 : vector<3x2000xf32> to vector<3x2000xbf16>
    %c0_31 = arith.constant 0 : index
    %c0_32 = arith.constant 0 : index
    %56 = vector.load %arg14[%c0_31, %c0_32] : memref<2000x128xbf16, #tpu.memory_space<vmem>>, vector<2000x128xbf16>
    %cst_33 = arith.constant dense<0.000000e+00> : vector<3x128xf32>
    %57 = tpu.matmul %55, %56, %cst_33 {dimension_numbers = #tpu.dot_dimension_numbers<[1], [0], [0], [1], [0, 0, 1, 1], [], []>} : vector<3x2000xbf16>, vector<2000x128xbf16>, vector<3x128xf32> -> vector<3x128xf32>
    %c0_34 = arith.constant 0 : index
    %c0_35 = arith.constant 0 : index
    %58 = vector.load %arg9[%c0_34, %c0_35] : memref<1x128xf32, #tpu.memory_space<vmem>>, vector<1x128xf32>
    %59 = vector.broadcast %58 : vector<1x128xf32> to vector<3x128xf32>
    %60 = arith.addf %57, %59 : vector<3x128xf32>
    %c0_36 = arith.constant 0 : index
    %c0_37 = arith.constant 0 : index
    %61 = vector.load %arg12[%c0_36, %c0_37] : memref<3x128xf32, #tpu.memory_space<vmem>>, vector<3x128xf32>
    tpu.vector_store %arg12[%c0_36, %c0_37], %60 {strides = array<i32>} : memref<3x128xf32, #tpu.memory_space<vmem>>, vector<3x128xf32>,
    return
  }
}

</mosaic_0001>

<bundles_post_ra>
// kernel: mlp_forward.1
= control target key start
LH: loop header
LB: loop body
LE: loop exit
PB: predicated region body
PF: predicated region fallthrough
CT: control target
= control target key end

     0   :  { %17 = vsyncpa [#allocation6], 0  ;;  %vm240_vm0 = vcmask 1043456   ;;  %v2715_v60 = vmov 0.0   ;;  %vm233_vm1 = vcmask 31744   ;;  %s3413_s0 = inlined_call_operand.vmem [shape: f32[15,4], index: 0, kind: input, shape index: {}]   ;;  %s3414_s1 = inlined_call_operand.vmem [shape: f32[4,512], index: 1, kind: input, shape index: {}]   ;;  %s3415_s2 = inlined_call_operand.vmem [shape: f32[1,512], index: 2, kind: input, shape index: {}]   ;;  %s3416_s3 = inlined_call_operand.vmem [shape: f32[512,10], index: 3, kind: input, shape index: {}]   ;;  %s3417_s4 = inlined_call_operand.vmem [shape: f32[1,10], index: 4, kind: input, shape index: {}]   ;;  %s3418_s5 = inlined_call_operand.vmem [shape: f32[15,15], index: 5, kind: input, shape index: {}]   ;;  %s3419_s6 = inlined_call_operand.vmem [shape: f32[15,1], index: 6, kind: input, shape index: {}]   ;;  %s3420_s7 = inlined_call_operand.vmem [shape: f32[15,1], index: 7, kind: input, shape index: {}]   ;;  %s3421_s8 = inlined_call_operand.vmem [shape: f32[1,2000], index: 8, kind: input, shape index: {}]   ;;  %s3422_s9 = inlined_call_operand.vmem [shape: f32[1,128], index: 9, kind: input, shape index: {}]   ;;  %s3423_s10 = inlined_call_operand.vmem [shape: bf16[50,2000], index: 10, kind: input, shape index: {}]   ;;  %s3424_s11 = inlined_call_operand.hbm [shape: bf16[2000,128], index: 11, kind: input, shape index: {}]   ;;  %s3425_s12 = inlined_call_operand.hbm [shape: f32[3,128], index: 12, kind: output, shape index: {}]  }
   0x1   :  { %v71_v0 = vld [vmem:[%s3423_s10] sm:$0xff]  ;;  %v73_v1 = vld [vmem:[%s3423_s10 + $0x8] sm:$0xff]  ;;  %v75_v2 = vld [vmem:[%s3423_s10 + $0x10] sm:$0xff]  ;;  %313 = vmatprep.mubr.f32.mxu0 %v2715_v60  ;;  %390 = vmatprep.mubr.f32.mxu1 %v2715_v60 }
   0x2   :  { %72 = vst [vmem:[#allocation2] sm:$0xff] %v71_v0  ;;  %74 = vst [vmem:[#allocation2 + $0x8] sm:$0xff] %v73_v1  ;;  %v77_v3 = vld [vmem:[%s3423_s10 + $0x18] sm:$0xff]  ;;  %v79_v4 = vld [vmem:[%s3423_s10 + $0x20] sm:$0xff] }
   0x3   :  { %76 = vst [vmem:[#allocation2 + $0x10] sm:$0xff] %v75_v2  ;;  %78 = vst [vmem:[#allocation2 + $0x18] sm:$0xff] %v77_v3  ;;  %v81_v5 = vld [vmem:[%s3423_s10 + $0x28] sm:$0xff]  ;;  %v83_v6 = vld [vmem:[%s3423_s10 + $0x30] sm:$0xff] }
   0x4   :  { %80 = vst [vmem:[#allocation2 + $0x20] sm:$0xff] %v79_v4  ;;  %v85_v7 = vld [vmem:[%s3423_s10 + $0x38] sm:$0xff]  ;;  %82 = vst [vmem:[#allocation2 + $0x28] sm:$0xff] %v81_v5  ;;  %v87_v8 = vld [vmem:[%s3423_s10 + $0x40] sm:$0xff] }
   0x5   :  { %84 = vst [vmem:[#allocation2 + $0x30] sm:$0xff] %v83_v6  ;;  %86 = vst [vmem:[#allocation2 + $0x38] sm:$0xff] %v85_v7  ;;  %v89_v9 = vld [vmem:[%s3423_s10 + $0x48] sm:$0xff]  ;;  %v91_v10 = vld [vmem:[%s3423_s10 + $0x50] sm:$0xff] }
   0x6   :  { %88 = vst [vmem:[#allocation2 + $0x40] sm:$0xff] %v87_v8  ;;  %90 = vst [vmem:[#allocation2 + $0x48] sm:$0xff] %v89_v9  ;;  %v93_v11 = vld [vmem:[%s3423_s10 + $0x58] sm:$0xff]  ;;  %v95_v12 = vld [vmem:[%s3423_s10 + $0x60] sm:$0xff] }
   0x7   :  { %92 = vst [vmem:[#allocation2 + $0x50] sm:$0xff] %v91_v10  ;;  %v97_v13 = vld [vmem:[%s3423_s10 + $0x68] sm:$0xff]  ;;  %94 = vst [vmem:[#allocation2 + $0x58] sm:$0xff] %v93_v11  ;;  %v99_v14 = vld [vmem:[%s3423_s10 + $0x70] sm:$0xff] }
   0x8   :  { %96 = vst [vmem:[#allocation2 + $0x60] sm:$0xff] %v95_v12  ;;  %98 = vst [vmem:[#allocation2 + $0x68] sm:$0xff] %v97_v13  ;;  %v101_v15 = vld [vmem:[%s3423_s10 + $0x78] sm:$0xff]  ;;  %v103_v16 = vld [vmem:[%s3423_s10 + $0x80] sm:$0xff] }
   0x9   :  { %100 = vst [vmem:[#allocation2 + $0x70] sm:$0xff] %v99_v14  ;;  %102 = vst [vmem:[#allocation2 + $0x78] sm:$0xff] %v101_v15  ;;  %v105_v17 = vld [vmem:[%s3423_s10 + $0x88] sm:$0xff]  ;;  %v107_v18 = vld [vmem:[%s3423_s10 + $0x90] sm:$0xff] }
   0xa   :  { %104 = vst [vmem:[#allocation2 + $0x80] sm:$0xff] %v103_v16  ;;  %v109_v19 = vld [vmem:[%s3423_s10 + $0x98] sm:$0xff]  ;;  %106 = vst [vmem:[#allocation2 + $0x88] sm:$0xff] %v105_v17  ;;  %v111_v20 = vld [vmem:[%s3423_s10 + $0xa0] sm:$0xff] }
   0xb   :  { %108 = vst [vmem:[#allocation2 + $0x90] sm:$0xff] %v107_v18  ;;  %110 = vst [vmem:[#allocation2 + $0x98] sm:$0xff] %v109_v19  ;;  %v113_v21 = vld [vmem:[%s3423_s10 + $0xa8] sm:$0xff]  ;;  %v115_v22 = vld [vmem:[%s3423_s10 + $0xb0] sm:$0xff] }
   0xc   :  { %112 = vst [vmem:[#allocation2 + $0xa0] sm:$0xff] %v111_v20  ;;  %114 = vst [vmem:[#allocation2 + $0xa8] sm:$0xff] %v113_v21  ;;  %v117_v23 = vld [vmem:[%s3423_s10 + $0xb8] sm:$0xff]  ;;  %v119_v24 = vld [vmem:[%s3423_s10 + $0xc0] sm:$0xff] }
   0xd   :  { %116 = vst [vmem:[#allocation2 + $0xb0] sm:$0xff] %v115_v22  ;;  %v121_v25 = vld [vmem:[%s3423_s10 + $0xc8] sm:$0xff]  ;;  %118 = vst [vmem:[#allocation2 + $0xb8] sm:$0xff] %v117_v23  ;;  %v123_v26 = vld [vmem:[%s3423_s10 + $0xd0] sm:$0xff] }
   0xe   :  { %120 = vst [vmem:[#allocation2 + $0xc0] sm:$0xff] %v119_v24  ;;  %122 = vst [vmem:[#allocation2 + $0xc8] sm:$0xff] %v121_v25  ;;  %v125_v27 = vld [vmem:[%s3423_s10 + $0xd8] sm:$0xff]  ;;  %v127_v28 = vld [vmem:[%s3423_s10 + $0xe0] sm:$0xff] }
   0xf   :  { %124 = vst [vmem:[#allocation2 + $0xd0] sm:$0xff] %v123_v26  ;;  %126 = vst [vmem:[#allocation2 + $0xd8] sm:$0xff] %v125_v27  ;;  %v129_v29 = vld [vmem:[%s3423_s10 + $0xe8] sm:$0xff]  ;;  %v131_v30 = vld [vmem:[%s3423_s10 + $0xf0] sm:$0xff] }
  0x10   :  { %128 = vst [vmem:[#allocation2 + $0xe0] sm:$0xff] %v127_v28  ;;  %v133_v31 = vld [vmem:[%s3423_s10 + $0xf8] sm:$0xff]  ;;  %130 = vst [vmem:[#allocation2 + $0xe8] sm:$0xff] %v129_v29  ;;  %v135_v32 = vld [vmem:[%s3423_s10 + $0x100] sm:$0xff] }
  0x11   :  { %132 = vst [vmem:[#allocation2 + $0xf0] sm:$0xff] %v131_v30  ;;  %134 = vst [vmem:[#allocation2 + $0xf8] sm:$0xff] %v133_v31  ;;  %v137_v33 = vld [vmem:[%s3423_s10 + $0x108] sm:$0xff]  ;;  %v139_v34 = vld [vmem:[%s3423_s10 + $0x110] sm:$0xff] }
  0x12   :  { %136 = vst [vmem:[#allocation2 + $0x100] sm:$0xff] %v135_v32  ;;  %138 = vst [vmem:[#allocation2 + $0x108] sm:$0xff] %v137_v33  ;;  %v141_v35 = vld [vmem:[%s3423_s10 + $0x118] sm:$0xff]  ;;  %v143_v36 = vld [vmem:[%s3423_s10 + $0x120] sm:$0xff] }
  0x13   :  { %140 = vst [vmem:[#allocation2 + $0x110] sm:$0xff] %v139_v34  ;;  %v145_v37 = vld [vmem:[%s3423_s10 + $0x128] sm:$0xff]  ;;  %142 = vst [vmem:[#allocation2 + $0x118] sm:$0xff] %v141_v35  ;;  %v147_v38 = vld [vmem:[%s3423_s10 + $0x130] sm:$0xff] }
  0x14   :  { %144 = vst [vmem:[#allocation2 + $0x120] sm:$0xff] %v143_v36  ;;  %146 = vst [vmem:[#allocation2 + $0x128] sm:$0xff] %v145_v37  ;;  %v149_v39 = vld [vmem:[%s3423_s10 + $0x138] sm:$0xff]  ;;  %v151_v40 = vld [vmem:[%s3423_s10 + $0x140] sm:$0xff] }
  0x15   :  { %148 = vst [vmem:[#allocation2 + $0x130] sm:$0xff] %v147_v38  ;;  %150 = vst [vmem:[#allocation2 + $0x138] sm:$0xff] %v149_v39  ;;  %v153_v41 = vld [vmem:[%s3423_s10 + $0x148] sm:$0xff]  ;;  %v155_v42 = vld [vmem:[%s3423_s10 + $0x150] sm:$0xff] }
  0x16   :  { %152 = vst [vmem:[#allocation2 + $0x140] sm:$0xff] %v151_v40  ;;  %v157_v43 = vld [vmem:[%s3423_s10 + $0x158] sm:$0xff]  ;;  %154 = vst [vmem:[#allocation2 + $0x148] sm:$0xff] %v153_v41  ;;  %v159_v44 = vld [vmem:[%s3423_s10 + $0x160] sm:$0xff] }
  0x17   :  { %156 = vst [vmem:[#allocation2 + $0x150] sm:$0xff] %v155_v42  ;;  %158 = vst [vmem:[#allocation2 + $0x158] sm:$0xff] %v157_v43  ;;  %v161_v45 = vld [vmem:[%s3423_s10 + $0x168] sm:$0xff]  ;;  %v163_v46 = vld [vmem:[%s3423_s10 + $0x170] sm:$0xff] }
  0x18   :  { %160 = vst [vmem:[#allocation2 + $0x160] sm:$0xff] %v159_v44  ;;  %162 = vst [vmem:[#allocation2 + $0x168] sm:$0xff] %v161_v45  ;;  %v165_v47 = vld [vmem:[%s3423_s10 + $0x178] sm:$0xff]  ;;  %v167_v48 = vld [vmem:[%s3423_s10 + $0x180] sm:$0xff] }
  0x19   :  { %164 = vst [vmem:[#allocation2 + $0x170] sm:$0xff] %v163_v46  ;;  %v169_v49 = vld [vmem:[%s3423_s10 + $0x188] sm:$0xff]  ;;  %166 = vst [vmem:[#allocation2 + $0x178] sm:$0xff] %v165_v47  ;;  %v171_v50 = vld [vmem:[%s3423_s10 + $0x190] sm:$0xff] }
  0x1a   :  { %168 = vst [vmem:[#allocation2 + $0x180] sm:$0xff] %v167_v48  ;;  %170 = vst [vmem:[#allocation2 + $0x188] sm:$0xff] %v169_v49  ;;  %v173_v51 = vld [vmem:[%s3423_s10 + $0x198] sm:$0xff]  ;;  %v175_v52 = vld [vmem:[%s3423_s10 + $0x1a0] sm:$0xff] }
  0x1b   :  { %172 = vst [vmem:[#allocation2 + $0x190] sm:$0xff] %v171_v50  ;;  %174 = vst [vmem:[#allocation2 + $0x198] sm:$0xff] %v173_v51  ;;  %v177_v53 = vld [vmem:[%s3423_s10 + $0x1a8] sm:$0xff]  ;;  %v179_v54 = vld [vmem:[%s3423_s10 + $0x1b0] sm:$0xff] }
  0x1c   :  { %176 = vst [vmem:[#allocation2 + $0x1a0] sm:$0xff] %v175_v52  ;;  %v181_v55 = vld [vmem:[%s3423_s10 + $0x1b8] sm:$0xff]  ;;  %178 = vst [vmem:[#allocation2 + $0x1a8] sm:$0xff] %v177_v53  ;;  %v205_v56 = vld [vmem:[%s3414_s1] sm:$0xff] }
  0x1d   :  { %180 = vst [vmem:[#allocation2 + $0x1b0] sm:$0xff] %v179_v54  ;;  %182 = vst [vmem:[#allocation2 + $0x1b8] sm:$0xff] %v181_v55  ;;  %v206_v57 = vld [vmem:[%s3414_s1 + $0x8] sm:$0xff]  ;;  %v231_v58 = vcombine.high %v205_v56, %v205_v56  ;;  %v203_v61 = vld [vmem:[%s3413_s0] sm:$0xff] }
  0x1e   :  { %v232_v59 = vcombine.high %v206_v57, %v206_v57  ;;  %v427_v62 = vld [vmem:[%s3416_s3 + $0x80] sm:$0xff]  ;;  %v428_v63 = vld [vmem:[%s3416_s3 + $0x88] sm:$0xff]  ;;  %v429_v11 = vld [vmem:[%s3416_s3 + $0x90] sm:$0xff] }
  0x1f   :  { %v459_v0 = vld [vmem:[%s3416_s3 + $0x180] sm:$0xff]  ;;  %v460_v1 = vld [vmem:[%s3416_s3 + $0x188] sm:$0xff]  ;;  %2205 = vmatprep.subr.msk.mxu0 %vm240_vm0, %v231_v58  ;;  %v2556_v3 = vpack.c.bf16 %v428_v63, %v427_v62  ;;  %v430_v12 = vld [vmem:[%s3416_s3 + $0x98] sm:$0xff] }
  0x20   :  { %v411_v2 = vld [vmem:[%s3416_s3] sm:$0xff]  ;;  %2209 = vmatprep.subr.msk.mxu1 %vm240_vm0, %v232_v59  ;;  %v2588_v4 = vpack.c.bf16 %v460_v1, %v459_v0  ;;  %v412_v5 = vld [vmem:[%s3416_s3 + $0x8] sm:$0xff]  ;;  %2206 = vmatpush1.msk.msra.mxu0 %vm240_vm0, %v205_v56  ;;  %v461_v13 = vld [vmem:[%s3416_s3 + $0x190] sm:$0xff]  ;;  %v2560_v17 = vpack.c.bf16 %v430_v12, %v429_v11 }
  0x21   :  { %v443_v6 = vld [vmem:[%s3416_s3 + $0x100] sm:$0xff]  ;;  %v444_v7 = vld [vmem:[%s3416_s3 + $0x108] sm:$0xff]  ;;  %2210 = vmatpush1.msk.msra.mxu1 %vm240_vm0, %v206_v57  ;;  %v2558_v9 = vpack.c.bf16 %v412_v5, %v411_v2  ;;  %2207 = vmatmul.mubr.msk.f32.vlgmr.msra.gmra.mrb[0].mxu0 %vm233_vm1, %v203_v61  ;;  %v462_v14 = vld [vmem:[%s3416_s3 + $0x198] sm:$0xff] }
  0x22   :  { %v204_v8 = vld [vmem:[%s3413_s0 + $0x8] sm:$0x7f]  ;;  %v2590_v10 = vpack.c.bf16 %v444_v7, %v443_v6  ;;  %2211 = vmatmul.mubr.msk.f32.vlgmr.msra.gmra.mrb[0].mxu1 %vm233_vm1, %v203_v61  ;;  %v413_v15 = vld [vmem:[%s3416_s3 + $0x10] sm:$0xff]  ;;  %v414_v16 = vld [vmem:[%s3416_s3 + $0x18] sm:$0xff]  ;;  %319 = vmatprep.mubr.f32.mxu0 %v2715_v60  ;;  %v2592_v18 = vpack.c.bf16 %v462_v14, %v461_v13 }
  0x23   :  { %396 = vmatprep.mubr.f32.mxu1 %v2715_v60  ;;  %v445_v19 = vld [vmem:[%s3416_s3 + $0x110] sm:$0xff]  ;;  %v446_v20 = vld [vmem:[%s3416_s3 + $0x118] sm:$0xff]  ;;  %v431_v21 = vld [vmem:[%s3416_s3 + $0xa0] sm:$0xff]  ;;  %2557 = vmatprep.subr.bf16.mxu0 %v2556_v3  ;;  %v2562_v25 = vpack.c.bf16 %v414_v16, %v413_v15 }
  0x24   :  { %2589 = vmatprep.subr.bf16.mxu1 %v2588_v4  ;;  %v432_v22 = vld [vmem:[%s3416_s3 + $0xa8] sm:$0xff]  ;;  %v463_v23 = vld [vmem:[%s3416_s3 + $0x1a0] sm:$0xff]  ;;  %2559 = vmatpush3.bf16.msra.mxu0 %v2558_v9  ;;  %v2594_v26 = vpack.c.bf16 %v446_v20, %v445_v19  ;;  %v433_v33 = vld [vmem:[%s3416_s3 + $0xb0] sm:$0xff] }
  0x25   :  { %v464_v24 = vld [vmem:[%s3416_s3 + $0x1a8] sm:$0xff]  ;;  %2591 = vmatpush3.bf16.msra.mxu1 %v2590_v10  ;;  %v415_v27 = vld [vmem:[%s3416_s3 + $0x20] sm:$0xff]  ;;  %2208 = vmatmul.mubr.msk.f32.gmra.mrb[2].mxu0 %vm233_vm1, %v204_v8  ;;  %v2564_v29 = vpack.c.bf16 %v432_v22, %v431_v21  ;;  %v434_v34 = vld [vmem:[%s3416_s3 + $0xb8] sm:$0xff] }
  0x26   :  { %v416_v28 = vld [vmem:[%s3416_s3 + $0x28] sm:$0xff]  ;;  %2212 = vmatmul.mubr.msk.f32.gmra.mrb[2].mxu1 %vm233_vm1, %v204_v8  ;;  %v2596_v30 = vpack.c.bf16 %v464_v24, %v463_v23  ;;  %v447_v31 = vld [vmem:[%s3416_s3 + $0x120] sm:$0xff]  ;;  %2561 = vmatprep.subr.bf16.mxu0 %v2560_v17  ;;  %v465_v35 = vld [vmem:[%s3416_s3 + $0x1b0] sm:$0xff]  ;;  %v2568_v41 = vpack.c.bf16 %v434_v34, %v433_v33 }
  0x27   :  { %v448_v32 = vld [vmem:[%s3416_s3 + $0x128] sm:$0xff]  ;;  %2593 = vmatprep.subr.bf16.mxu1 %v2592_v18  ;;  %v466_v36 = vld [vmem:[%s3416_s3 + $0x1b8] sm:$0xff]  ;;  %v2566_v37 = vpack.c.bf16 %v416_v28, %v415_v27  ;;  %v417_v39 = vld [vmem:[%s3416_s3 + $0x30] sm:$0xff] }
  0x28   :  { %2563 = vmatpush3.bf16.msra.mxu0 %v2562_v25  ;;  %v2598_v38 = vpack.c.bf16 %v448_v32, %v447_v31  ;;  %v418_v40 = vld [vmem:[%s3416_s3 + $0x38] sm:$0xff]  ;;  %v2600_v42 = vpack.c.bf16 %v466_v36, %v465_v35  ;;  %v449_v43 = vld [vmem:[%s3416_s3 + $0x130] sm:$0xff]  ;;  %v435_v45 = vld [vmem:[%s3416_s3 + $0xc0] sm:$0xff] }
  0x29   :  { %2595 = vmatpush3.bf16.msra.mxu1 %v2594_v26  ;;  %2565 = vmatprep.subr.bf16.mxu0 %v2564_v29  ;;  %v450_v44 = vld [vmem:[%s3416_s3 + $0x138] sm:$0xff]  ;;  %v436_v46 = vld [vmem:[%s3416_s3 + $0xc8] sm:$0xff]  ;;  %v467_v47 = vld [vmem:[%s3416_s3 + $0x1c0] sm:$0xff]  ;;  %v2570_v49 = vpack.c.bf16 %v418_v40, %v417_v39 }
  0x2a   :  { %2597 = vmatprep.subr.bf16.mxu1 %v2596_v30  ;;  %v468_v48 = vld [vmem:[%s3416_s3 + $0x1c8] sm:$0xff]  ;;  %v2602_v50 = vpack.c.bf16 %v450_v44, %v449_v43  ;;  %v419_v51 = vld [vmem:[%s3416_s3 + $0x40] sm:$0xff]  ;;  %v2572_v53 = vpack.c.bf16 %v436_v46, %v435_v45  ;;  %v437_v57 = vld [vmem:[%s3416_s3 + $0xd0] sm:$0xff] }
  0x2b   :  { %v420_v52 = vld [vmem:[%s3416_s3 + $0x48] sm:$0xff]  ;;  %v2604_v54 = vpack.c.bf16 %v468_v48, %v467_v47  ;;  %v451_v55 = vld [vmem:[%s3416_s3 + $0x140] sm:$0xff]  ;;  %v438_v58 = vld [vmem:[%s3416_s3 + $0xd8] sm:$0xff] }
  0x2c   :  { %2567 = vmatpush3.bf16.msra.mxu0 %v2566_v37  ;;  %v452_v56 = vld [vmem:[%s3416_s3 + $0x148] sm:$0xff]  ;;  %v469_v59 = vld [vmem:[%s3416_s3 + $0x1d0] sm:$0xff]  ;;  %v470_v60 = vld [vmem:[%s3416_s3 + $0x1d8] sm:$0xff] }
  0x2d   :  { %2599 = vmatpush3.bf16.msra.mxu1 %v2598_v38  ;;  %2569 = vmatprep.subr.bf16.mxu0 %v2568_v41 }
  0x2e   :  { %2601 = vmatprep.subr.bf16.mxu1 %v2600_v42 }
  0x2f   :  { %190 = vsyncadd [#allocation4], 7168  ;;  %v2574_v61 = vpack.c.bf16 %v420_v52, %v419_v51  ;;  %v2606_v62 = vpack.c.bf16 %v452_v56, %v451_v55  ;;  %v421_v63 = vld [vmem:[%s3416_s3 + $0x50] sm:$0xff]  ;;  %v422_v0 = vld [vmem:[%s3416_s3 + $0x58] sm:$0xff]  ;;  %v2576_v1 = vpack.c.bf16 %v438_v58, %v437_v57  ;;  %v2608_v2 = vpack.c.bf16 %v470_v60, %v469_v59  ;;  %s2665_s29 = scalar_lea.hbm %s3424_s11, 16000 }
  0x30   :  { %2571 = vmatpush3.bf16.msra.mxu0 %v2570_v49  ;;  %v453_v3 = vld [vmem:[%s3416_s3 + $0x150] sm:$0xff]  ;;  %v454_v4 = vld [vmem:[%s3416_s3 + $0x158] sm:$0xff]  ;;  %v439_v5 = vld [vmem:[%s3416_s3 + $0xe0] sm:$0xff]  ;;  %v2578_v9 = vpack.c.bf16 %v422_v0, %v421_v63  ;;  %v209_v31 = vlaneseq  ;;  %vm634_vm2 = vcmask 121856   ;;  %vm641_vm3 = vcmask 1046528   ;;  %p2666_p0 = scmp.ne.s32.totalorder %s3424_s11, %s2665_s29  ;;  %p2669_p1 = scmp.lt.u32.totalorder %s2665_s29, %s3424_s11 }
  0x31   :  { %2603 = vmatpush3.bf16.msra.mxu1 %v2602_v50  ;;  %2573 = vmatprep.subr.bf16.mxu0 %v2572_v53  ;;  %v440_v6 = vld [vmem:[%s3416_s3 + $0xe8] sm:$0xff]  ;;  %v471_v7 = vld [vmem:[%s3416_s3 + $0x1e0] sm:$0xff]  ;;  %v2610_v10 = vpack.c.bf16 %v454_v4, %v453_v3  ;;  %v441_v19 = vld [vmem:[%s3416_s3 + $0xf0] sm:$0xff]  ;;  %vm2717_vm4 = vmmov 1  }
  0x32   :  { %2605 = vmatprep.subr.bf16.mxu1 %v2604_v54  ;;  %v472_v8 = vld [vmem:[%s3416_s3 + $0x1e8] sm:$0xff]  ;;  %v2580_v11 = vpack.c.bf16 %v440_v6, %v439_v5  ;;  %v423_v13 = vld [vmem:[%s3416_s3 + $0x60] sm:$0xff]  ;;  %v442_v20 = vld [vmem:[%s3416_s3 + $0xf8] sm:$0xff]  ;;  %v3169_v32 = vshrl.u32 %v209_v31, 7  ;;  %v2716_v5 = vmov 0   ;;  %p2671_p2 = pnand %p2669_p1, %p2666_p0 }
  0x33   :  { %v2612_v12 = vpack.c.bf16 %v472_v8, %v471_v7  ;;  %v424_v14 = vld [vmem:[%s3416_s3 + $0x68] sm:$0xff]  ;;  %v455_v15 = vld [vmem:[%s3416_s3 + $0x160] sm:$0xff]  ;;  %v473_v21 = vld [vmem:[%s3416_s3 + $0x1f0] sm:$0xff]  ;;  %v2584_v22 = vpack.c.bf16 %v442_v20, %v441_v19  ;;  %2641 = vset.pattern.permute.xlu0 %v2716_v5  ;;  %2642 = vset.pattern.permute.xlu1 %v2716_v5 }
  0x34   :  { %2575 = vmatpush3.bf16.msra.mxu0 %v2574_v61  ;;  %v2582_v16 = vpack.c.bf16 %v424_v14, %v423_v13  ;;  %v456_v17 = vld [vmem:[%s3416_s3 + $0x168] sm:$0xff]  ;;  %v474_v23 = vld [vmem:[%s3416_s3 + $0x1f8] sm:$0xff]  ;;  %v425_v24 = vld [vmem:[%s3416_s3 + $0x70] sm:$0xff]  ;;  %v3172_v33 = vsub.s32 0, %v3169_v32  ;;  %v3175_v34 = vsub.s32 2, %v3169_v32  ;;  %v3181_v36 = vsub.s32 1, %v3169_v32 }
  0x35   :  { %2607 = vmatpush3.bf16.msra.mxu1 %v2606_v62  ;;  %2577 = vmatprep.subr.bf16.mxu0 %v2576_v1  ;;  %v2614_v18 = vpack.c.bf16 %v456_v17, %v455_v15  ;;  %v426_v25 = vld [vmem:[%s3416_s3 + $0x78] sm:$0xff]  ;;  %v2616_v26 = vpack.c.bf16 %v474_v23, %v473_v21  ;;  %v457_v28 = vld [vmem:[%s3416_s3 + $0x170] sm:$0xff]  ;;  %v207_v35 = vld [vmem:[%s3415_s2] sm:$0xf]  ;;  %v3184_v37 = vsub.s32 3, %v3169_v32 }
  0x36   :  { %2609 = vmatprep.subr.bf16.mxu1 %v2608_v2  ;;  %v2586_v27 = vpack.c.bf16 %v426_v25, %v425_v24  ;;  %v458_v29 = vld [vmem:[%s3416_s3 + $0x178] sm:$0xff]  ;;  %v212_v38 = vrot.slane %v207_v35, %v3172_v33  ;;  %v220_v39 = vrot.slane %v207_v35, %v3175_v34  ;;  %v216_v40 = vrot.slane %v207_v35, %v3181_v36  ;;  %v632_v2 = vld [vmem:[%s3418_s5] sm:$0xff]  ;;  %v813_v6 = vld [vmem:[%s3419_s6 + $0x8] sm:$0x7f] }
  0x37   :  { %v2618_v30 = vpack.c.bf16 %v458_v29, %v457_v28  ;;  %v224_v41 = vrot.slane %v207_v35, %v3184_v37  ;;  %v812_v3 = vld [vmem:[%s3419_s6] sm:$0xff]  ;;  %v827_v7 = vld [vmem:[%s3420_s7 + $0x8] sm:$0x7f]  ;;  %vm2621_vm5 = vmpackc.low %vm641_vm3, %vm2717_vm4 }
  0x38   :  { %2579 = vmatpush3.bf16.msra.mxu0 %v2578_v9  ;;  %v826_v4 = vld [vmem:[%s3420_s7] sm:$0xff]  ;;  %816 = vperm.xlu0 %2641, %v812_v3   ;;  %v633_v29 = vld [vmem:[%s3418_s5 + $0x8] sm:$0x7f]  ;;  %s2718_s5 = smov [#allocation3]  }
  0x39   :  { %2611 = vmatpush3.bf16.msra.mxu1 %v2610_v10  ;;  %2581 = vmatprep.subr.bf16.mxu0 %v2580_v11  ;;  %v2213_v10 = vld [vmem:[%s3417_s4] ss:$0 sm:$0xff]  ;;  %s199_s7 = sshll.u32 %s2718_s5, 4  ;;  %s200_s7 = int_to_ptr.vmem [resolvable:$true] %s199_s7 }
  0x3a   :  { %2613 = vmatprep.subr.bf16.mxu1 %v2612_v12  ;;  %830 = vperm.xlu1 %2642, %v826_v4  }
  0x3c   :  { %2583 = vmatpush3.bf16.msra.mxu0 %v2582_v16  ;;  %821 = vperm.xlu0 %2641, %v813_v6  }
  0x3d   :  { %2615 = vmatpush3.bf16.msra.mxu1 %v2614_v18  ;;  %2585 = vmatprep.subr.bf16.mxu0 %v2584_v22 }
  0x3e   :  { %2617 = vmatprep.subr.bf16.mxu1 %v2616_v26  ;;  %835 = vperm.xlu1 %2642, %v827_v7  }
  0x40   :  { %2587 = vmatpush3.bf16.msra.mxu0 %v2586_v27 }
  0x41   :  { %2619 = vmatpush3.bf16.msra.mxu1 %v2618_v30 }
  0xf4   :  { %v315_v42 = vpop.f32.mrb[0].mxu0 }
  0xf5   :  { %v392_v43 = vpop.f32.mrb[0].mxu1  ;;  %v316_v44 = vadd.f32 %v315_v42, %v212_v38  ;;  %v317_v46 = vpop.f32.mrb[1].mxu0 }
  0xf6   :  { %v393_v45 = vadd.f32 %v392_v43, %v220_v39  ;;  %v394_v47 = vpop.f32.mrb[1].mxu1  ;;  %v318_v48 = vadd.f32 %v317_v46, %v216_v40  ;;  %v831_v46 = vpop.permute.xlu1 %830 }
  0xf7   :  { %v395_v49 = vadd.f32 %v394_v47, %v224_v41  ;;  %v403_v55 = vmax.f32 %v316_v44, 0.0 }
  0xf8   :  { %v405_v50 = vmax.f32 %v393_v45, 0.0  ;;  %v404_v51 = vmax.f32 %v318_v48, 0.0  ;;  %v321_v53 = vpop.f32.mrb[2].mxu0  ;;  %v817_v45 = vpop.permute.xlu0 %816 }
  0xf9   :  { %v406_v52 = vmax.f32 %v395_v49, 0.0  ;;  %v398_v54 = vpop.f32.mrb[2].mxu1  ;;  %v322_v56 = vadd.f32 %v321_v53, %v212_v38  ;;  %v323_v58 = vpop.f32.mrb[3].mxu0 }
  0xfa   :  { %v399_v57 = vadd.f32 %v398_v54, %v220_v39  ;;  %v400_v59 = vpop.f32.mrb[3].mxu1  ;;  %v324_v60 = vadd.f32 %v323_v58, %v216_v40  ;;  %546 = vmatprep.mubr.f32.mxu0 %v404_v51 }
  0xfb   :  { %v401_v61 = vadd.f32 %v400_v59, %v224_v41  ;;  %621 = vmatprep.mubr.f32.mxu1 %v406_v52  ;;  %547 = vmatmul.mubr.f32.vlgmr.msra.gmra.mrb[4].mxu0 %v403_v55  ;;  %v407_v1 = vmax.f32 %v322_v56, 0.0  ;;  %v836_v56 = vpop.permute.xlu1 %835 }
  0xfc   :  { %v409_v62 = vmax.f32 %v399_v57, 0.0  ;;  %622 = vmatmul.mubr.f32.vlgmr.msra.gmra.mrb[4].mxu1 %v405_v50  ;;  %v408_v63 = vmax.f32 %v324_v60, 0.0  ;;  %v822_v53 = vpop.permute.xlu0 %821 }
  0xfd   :  { %v410_v0 = vmax.f32 %v401_v61, 0.0 }
  0xfe   :  { %551 = vmatprep.mubr.f32.mxu0 %v408_v63 }
  0xff   :  { %626 = vmatprep.mubr.f32.mxu1 %v410_v0  ;;  %552 = vmatmul.mubr.f32.gmra.mrb[6].mxu0 %v407_v1 }
 0x100   :  { %627 = vmatmul.mubr.f32.gmra.mrb[6].mxu1 %v409_v62  ;;  %2546 = vmatprep.mubr.msk.f32.mxu0 %vm634_vm2, %v632_v2 }
 0x1ce   :  { %v2336_v8 = vpop.f32.mrb[4].mxu0 }
 0x1cf   :  { %v2374_v9 = vpop.f32.mrb[4].mxu1  ;;  %v2337_v11 = vpop.f32.mrb[5].mxu0 }
 0x1d0   :  { %v2375_v12 = vpop.f32.mrb[5].mxu1  ;;  %v2338_v13 = vadd.f32 %v2337_v11, %v2336_v8 }
 0x1d1   :  { %v2376_v14 = vadd.f32 %v2375_v12, %v2374_v9 }
 0x1d2   :  { %v549_v15 = vadd.f32 %v2338_v13, %v2213_v10  ;;  %v2339_v16 = vpop.f32.mrb[6].mxu0 }
 0x1d3   :  { %v2377_v17 = vpop.f32.mrb[6].mxu1  ;;  %v2340_v18 = vpop.f32.mrb[7].mxu0 }
 0x1d4   :  { %v2378_v19 = vpop.f32.mrb[7].mxu1  ;;  %v624_v20 = vadd.f32 %v2376_v14, %v549_v15  ;;  %v2341_v21 = vadd.f32 %v2340_v18, %v2339_v16 }
 0x1d5   :  { %v2379_v22 = vadd.f32 %v2378_v19, %v2377_v17 }
 0x1d6   :  { %v554_v23 = vadd.f32 %v2341_v21, %v2213_v10  ;;  %v720_v25 = vmul.f32 %v624_v20, %v624_v20 }
 0x1d8   :  { %v629_v24 = vadd.f32 %v2379_v22, %v554_v23 }
 0x1da   :  { %v2620_v26 = vpack.c.bf16 %v629_v24, %v624_v20  ;;  %v721_v27 = vmul.f32 %v629_v24, %v629_v24 }
 0x1dc   :  { %2622 = vmatprep.subr.msk.bf16.mxu0 %vm2621_vm5, %v2620_v26  ;;  %v2626_v28 = vpack.c.bf16 %v721_v27, %v720_v25 }
 0x1dd   :  { %2625 = vmatpush3.bf16.msk.msra.mxu0 %vm2621_vm5, %v2620_v26 }
 0x1de   :  { %2628 = vmatprep.subr.msk.bf16.mxu0 %vm2621_vm5, %v2626_v28 }
 0x1e0   :  { %2547 = vmatmul.mubr.msk.f32.vlgmr.msra.gmra.mrb[8].mxu0 %vm634_vm2, %v633_v29 }
 0x1e1   :  { %2631 = vmatpush3.bf16.msk.msra.mxu0 %vm2621_vm5, %v2626_v28  ;;  %2553 = vmatprep.mubr.msk.f32.mxu0 %vm634_vm2, %v632_v2 }
 0x1e4   :  { %2554 = vmatmul.mubr.msk.f32.vlgmr.msra.gmra.mrb[10].mxu0 %vm634_vm2, %v633_v29 }
 0x2b3   :  { %v2548_v30 = vpop.f32.mrb[8].mxu0 }
 0x2b4   :  { %v711_v31 = vpop.f32.mrb[9].mxu0  ;;  %v801_v35 = vmul.f32 %v2548_v30, %v2548_v30  ;;  %v805_v47 = vsub.f32 %v629_v24, %v2548_v30 }
 0x2b5   :  { %v800_v38 = vmul.f32 %v711_v31, %v711_v31  ;;  %v804_v49 = vsub.f32 %v624_v20, %v711_v31 }
 0x2b7   :  { %v2555_v39 = vpop.f32.mrb[10].mxu0 }
 0x2b8   :  { %v803_v40 = vsub.f32 %v2555_v39, %v801_v35  ;;  %v791_v41 = vpop.f32.mrb[11].mxu0 }
 0x2b9   :  { %v802_v42 = vsub.f32 %v791_v41, %v800_v38 }
 0x2ba   :  { %v807_v43 = vadd.f32 1e-06, %v803_v40 }
 0x2bb   :  { %v806_v44 = vadd.f32 1e-06, %v802_v42 }
 0x2bc   :  { %2645 = vrsqrt.f32 %v807_v43 }
 0x2bd   :  { %2647 = vrsqrt.f32 %v806_v44 }
 0x2c6   :  { %v2646_v48 = vpop.eup %2645 }
 0x2c7   :  { %v2648_v50 = vpop.eup %2647  ;;  %v811_v51 = vmul.f32 %v2646_v48, %v805_v47 }
 0x2c8   :  { %v810_v52 = vmul.f32 %v2648_v50, %v804_v49 }
 0x2c9   :  { %v825_v54 = vmul.f32 %v822_v53, %v811_v51 }
 0x2ca   :  { %v824_v55 = vmul.f32 %v817_v45, %v810_v52 }
 0x2cb   :  { %2674 = shalt.err (!%p2671_p2)  }
 0x2cc   :  { %s2675_s15 = scalar_lea.vmem %s200_s7, 16000  ;;  %p2680_p4 = scmp.lt.s32.totalorder %s200_s7, %s200_s7 }
 0x2cd   :  { %p2676_p3 = scmp.ne.s32.totalorder %s200_s7, %s2675_s15  ;;  %p2681_p5 = scmp.lt.s32.totalorder %s2675_s15, %s2675_s15 }
 0x2cf   :  { %p2682_p6 = por %p2681_p5, %p2680_p4 }
 0x2d1   :  { %p2683_p7 = pnand %p2682_p6, %p2676_p3 }
 0x2d3   :  { %2686 = shalt.err (!%p2683_p7)  }
 0x2d4   :  { %202 = dma.hbm_to_vmem [thread:$0]  %s3424_s11, 16000, %s200_s7, [#allocation4 + $0x1]  ;;  %v839_v57 = vadd.f32 %v836_v56, %v825_v54  ;;  %v838_v58 = vadd.f32 %v831_v46, %v824_v55  ;;  %vm848_vm6 = vcmask 1041408   ;;  %vm863_vm7 = vcmask 80896  }
 0x2d5   :  { %s2719_s1 = smov 10   ;;  %s2720_s2 = smov 20   ;;  %vm865_vm8 = vcmask 162816   ;;  %vm867_vm9 = vcmask 244736   ;;  %vm869_vm10 = vcmask 326656  }
 0x2d6   :  { %v841_v59 = vmax.f32 %v839_v57, 0.0  ;;  %v840_v60 = vmax.f32 %v838_v58, 0.0  ;;  %s2721_s3 = smov 30   ;;  %s2722_s17 = smov 40  }
 0x2d8   :  { %v850_v61 = vrot.slane %v841_v59, 6  ;;  %v849_v62 = vrot.slane %v840_v60, 6  ;;  %v843_v63 = vrot.slane %v840_v60, 3  ;;  %v855_v1 = vrot.slane %v841_v59, 1 }
 0x2d9   :  { %v859_v2 = vrot.slane %v841_v59, 4 }
 0x2da   :  { %844 = vrot.lane.b32.xlu0 %v843_v63, %s2719_s1  ;;  %v851_v0 = vsel %vm848_vm6, %v849_v62, %v850_v61 }
 0x2db   :  { %852 = vrot.lane.b32.xlu1 %v851_v0, %s2720_s2 }
 0x2de   :  { %856 = vrot.lane.b32.xlu0 %v855_v1, %s2721_s3 }
 0x2df   :  { %860 = vrot.lane.b32.xlu1 %v859_v2, %s2722_s17 }
 0x34c   :  { %v845_v3 = vpop.permute.xlu0 %844 }
 0x34d   :  { %v864_v4 = vsel %vm863_vm7, %v840_v60, %v845_v3  ;;  %v853_v6 = vpop.permute.xlu1 %852 }
 0x34e   :  { %v866_v7 = vsel %vm865_vm8, %v864_v4, %v853_v6 }
 0x350   :  { %v857_v8 = vpop.permute.xlu0 %856 }
 0x351   :  { %v868_v9 = vsel %vm867_vm9, %v866_v7, %v857_v8  ;;  %v861_v10 = vpop.permute.xlu1 %860 }
 0x352   :  { %v870_v11 = vsel %vm869_vm10, %v868_v9, %v861_v10 }
 0x353   :  { %2709 = dma.done.wait [#allocation4], 7168 }
 0x354   :  { %2710 = vsyncadd [#allocation4], 4294960128  ;;  %1381 = vmatprep.mubr.bf16.mxu0 %v2716_v5  ;;  %1422 = vmatprep.mubr.bf16.mxu1 %v2716_v5  ;;  %v876_v12 = vld [vmem:[#allocation2] sm:$0xff]  ;;  %v877_v14 = vld [vmem:[#allocation2 + $0x8] sm:$0xff]  ;;  %vm1300_vm11 = vcmask 1040384   ;;  %v3235_v57 = vpack.c.bf16 %v870_v11, %v870_v11  ;;  %vm1296_vm12 = vcmask 408576  }
 0x355   :  { %v884_v13 = vld [vmem:[#allocation2 + $0x40] sm:$0xff]  ;;  %v885_v16 = vld [vmem:[#allocation2 + $0x48] sm:$0xff]  ;;  %v878_v47 = vld [vmem:[#allocation2 + $0x10] sm:$0xff] }
 0x356   :  { %v2221_v15 = vcombine.high %v876_v12, %v884_v13  ;;  %v2220_v17 = vcombine.low %v876_v12, %v884_v13  ;;  %v892_v18 = vld [vmem:[#allocation2 + $0x80] sm:$0xff]  ;;  %v2223_v20 = vcombine.high %v877_v14, %v885_v16  ;;  %v2222_v21 = vcombine.low %v877_v14, %v885_v16  ;;  %v893_v23 = vld [vmem:[#allocation2 + $0x88] sm:$0xff]  ;;  %v886_v48 = vld [vmem:[#allocation2 + $0x50] sm:$0xff] }
 0x357   :  { %v900_v19 = vld [vmem:[#allocation2 + $0xc0] sm:$0xff]  ;;  %v901_v24 = vld [vmem:[#allocation2 + $0xc8] sm:$0xff]  ;;  %v879_v49 = vld [vmem:[#allocation2 + $0x18] sm:$0xff]  ;;  %v2225_v52 = vcombine.high %v878_v47, %v886_v48  ;;  %v2224_v60 = vcombine.low %v878_v47, %v886_v48 }
 0x358   :  { %v2237_v22 = vcombine.high %v892_v18, %v900_v19  ;;  %v908_v25 = vld [vmem:[#allocation2 + $0x100] sm:$0xff]  ;;  %1349 = vmatprep.subr.bf16.mxu0 %v2221_v15  ;;  %v2239_v26 = vcombine.high %v893_v23, %v901_v24  ;;  %v909_v28 = vld [vmem:[#allocation2 + $0x108] sm:$0xff]  ;;  %1390 = vmatprep.subr.bf16.mxu1 %v2223_v20  ;;  %v2236_v30 = vcombine.low %v892_v18, %v900_v19  ;;  %v887_v50 = vld [vmem:[#allocation2 + $0x58] sm:$0xff] }
 0x359   :  { %v916_v27 = vld [vmem:[#allocation2 + $0x140] sm:$0xff]  ;;  %v917_v29 = vld [vmem:[#allocation2 + $0x148] sm:$0xff]  ;;  %1350 = vmatpush1.bf16.msra.mxu0 %v2220_v17  ;;  %1391 = vmatpush1.bf16.msra.mxu1 %v2222_v21  ;;  %v2238_v31 = vcombine.low %v893_v23, %v901_v24  ;;  %v2227_v54 = vcombine.high %v879_v49, %v887_v50  ;;  %v894_v55 = vld [vmem:[#allocation2 + $0x90] sm:$0xff]  ;;  %v2226_v61 = vcombine.low %v879_v49, %v887_v50 }
 0x35a   :  { %1351 = vmatprep.subr.bf16.mxu0 %v2237_v22  ;;  %v2253_v35 = vcombine.high %v908_v25, %v916_v27  ;;  %1392 = vmatprep.subr.bf16.mxu1 %v2239_v26  ;;  %v2255_v38 = vcombine.high %v909_v28, %v917_v29  ;;  %v924_v39 = vld [vmem:[#allocation2 + $0x180] sm:$0x11]  ;;  %v925_v40 = vld [vmem:[#allocation2 + $0x188] sm:$0x11]  ;;  %v2252_v41 = vcombine.low %v908_v25, %v916_v27  ;;  %v902_v56 = vld [vmem:[#allocation2 + $0xd0] sm:$0xff] }
 0x35b   :  { %v2254_v42 = vcombine.low %v909_v28, %v917_v29  ;;  %v2269_v43 = vcombine.high %v924_v39, %v924_v39  ;;  %v2268_v44 = vcombine.low %v924_v39, %v924_v39  ;;  %v2271_v45 = vcombine.high %v925_v40, %v925_v40  ;;  %v895_v58 = vld [vmem:[#allocation2 + $0x98] sm:$0xff]  ;;  %v910_v0 = vld [vmem:[#allocation2 + $0x110] sm:$0xff]  ;;  %v880_v17 = vld [vmem:[#allocation2 + $0x20] sm:$0xff] }
 0x35c   :  { %v2270_v46 = vcombine.low %v925_v40, %v925_v40  ;;  %v903_v59 = vld [vmem:[#allocation2 + $0xd8] sm:$0xff]  ;;  %v2241_v62 = vcombine.high %v894_v55, %v902_v56  ;;  %v918_v1 = vld [vmem:[#allocation2 + $0x150] sm:$0xff]  ;;  %v2240_v4 = vcombine.low %v894_v55, %v902_v56  ;;  %v888_v18 = vld [vmem:[#allocation2 + $0x60] sm:$0xff] }
 0x35d   :  { %1352 = vmatpush1.bf16.msra.mxu0 %v2236_v30  ;;  %1393 = vmatpush1.bf16.msra.mxu1 %v2238_v31  ;;  %v1302_v51 = vsel %vm1300_vm11, %v2268_v44, 0  ;;  %v2243_v63 = vcombine.high %v895_v58, %v903_v59  ;;  %v911_v2 = vld [vmem:[#allocation2 + $0x118] sm:$0xff]  ;;  %v2242_v6 = vcombine.low %v895_v58, %v903_v59  ;;  %v2257_v7 = vcombine.high %v910_v0, %v918_v1  ;;  %v926_v9 = vld [vmem:[#allocation2 + $0x190] sm:$0x11]  ;;  %v881_v19 = vld [vmem:[#allocation2 + $0x28] sm:$0xff] }
 0x35e   :  { %1353 = vmatprep.subr.bf16.mxu0 %v2253_v35  ;;  %1394 = vmatprep.subr.bf16.mxu1 %v2255_v38  ;;  %v1308_v53 = vsel %vm1300_vm11, %v2270_v46, 0  ;;  %v919_v3 = vld [vmem:[#allocation2 + $0x158] sm:$0xff]  ;;  %v2256_v11 = vcombine.low %v910_v0, %v918_v1  ;;  %v2273_v13 = vcombine.high %v926_v9, %v926_v9  ;;  %v2272_v14 = vcombine.low %v926_v9, %v926_v9  ;;  %v889_v20 = vld [vmem:[#allocation2 + $0x68] sm:$0xff]  ;;  %v896_v25 = vld [vmem:[#allocation2 + $0xa0] sm:$0xff] }
 0x35f   :  { %v2259_v8 = vcombine.high %v911_v2, %v919_v3  ;;  %v927_v10 = vld [vmem:[#allocation2 + $0x198] sm:$0x11]  ;;  %v2258_v12 = vcombine.low %v911_v2, %v919_v3  ;;  %v2229_v22 = vcombine.high %v880_v17, %v888_v18  ;;  %v2231_v24 = vcombine.high %v881_v19, %v889_v20  ;;  %v904_v26 = vld [vmem:[#allocation2 + $0xe0] sm:$0xff]  ;;  %v897_v27 = vld [vmem:[#allocation2 + $0xa8] sm:$0xff] }
 0x360   :  { %v2275_v15 = vcombine.high %v927_v10, %v927_v10  ;;  %v2274_v16 = vcombine.low %v927_v10, %v927_v10  ;;  %v1314_v21 = vsel %vm1300_vm11, %v2272_v14, 0  ;;  %v905_v28 = vld [vmem:[#allocation2 + $0xe8] sm:$0xff]  ;;  %v2228_v29 = vcombine.low %v880_v17, %v888_v18  ;;  %v912_v38 = vld [vmem:[#allocation2 + $0x120] sm:$0xff]  ;;  %v890_v55 = vld [vmem:[#allocation2 + $0x70] sm:$0xff] }
 0x361   :  { %1354 = vmatpush1.bf16.msra.mxu0 %v2252_v41  ;;  %1395 = vmatpush1.bf16.msra.mxu1 %v2254_v42  ;;  %v2230_v30 = vcombine.low %v881_v19, %v889_v20  ;;  %v2245_v31 = vcombine.high %v896_v25, %v904_v26  ;;  %v2247_v35 = vcombine.high %v897_v27, %v905_v28  ;;  %v920_v39 = vld [vmem:[#allocation2 + $0x160] sm:$0xff]  ;;  %v913_v40 = vld [vmem:[#allocation2 + $0x128] sm:$0xff]  ;;  %v883_v56 = vld [vmem:[#allocation2 + $0x38] sm:$0xff] }
 0x362   :  { %2284 = vmatprep.subr.msk.bf16.mxu0 %vm1300_vm11, %v2269_v43  ;;  %2286 = vmatprep.subr.msk.bf16.mxu1 %vm1300_vm11, %v2271_v45  ;;  %v1320_v23 = vsel %vm1300_vm11, %v2274_v16, 0  ;;  %v921_v41 = vld [vmem:[#allocation2 + $0x168] sm:$0xff]  ;;  %v2244_v42 = vcombine.low %v896_v25, %v904_v26  ;;  %v2246_v43 = vcombine.low %v897_v27, %v905_v28  ;;  %v2261_v44 = vcombine.high %v912_v38, %v920_v39  ;;  %v928_v46 = vld [vmem:[#allocation2 + $0x1a0] sm:$0x11]  ;;  %v891_v58 = vld [vmem:[#allocation2 + $0x78] sm:$0xff] }
 0x363   :  { %v2263_v45 = vcombine.high %v913_v40, %v921_v41  ;;  %v929_v47 = vld [vmem:[#allocation2 + $0x1a8] sm:$0x11]  ;;  %v2260_v48 = vcombine.low %v912_v38, %v920_v39  ;;  %v2262_v49 = vcombine.low %v913_v40, %v921_v41  ;;  %v2277_v50 = vcombine.high %v928_v46, %v928_v46  ;;  %v906_v0 = vld [vmem:[#allocation2 + $0xf0] sm:$0xff]  ;;  %v899_v1 = vld [vmem:[#allocation2 + $0xb8] sm:$0xff] }
 0x364   :  { %v907_v2 = vld [vmem:[#allocation2 + $0xf8] sm:$0xff]  ;;  %v922_v9 = vld [vmem:[#allocation2 + $0x170] sm:$0xff]  ;;  %v932_v26 = vld [vmem:[%s3421_s8] sm:$0xff] }
 0x365   :  { %1356 = vmatpush1.bf16.msra.mxu0 %v1302_v51  ;;  %1397 = vmatpush1.bf16.msra.mxu1 %v1308_v53  ;;  %v2276_v51 = vcombine.low %v928_v46, %v928_v46  ;;  %v2278_v53 = vcombine.low %v929_v47, %v929_v47  ;;  %v915_v10 = vld [vmem:[#allocation2 + $0x138] sm:$0xff]  ;;  %v930_v16 = vld [vmem:[#allocation2 + $0x1b0] sm:$0x11]  ;;  %v939_v27 = vrot.slane %v932_v26, %v3172_v33 }
 0x366   :  { %1431 = vmatprep.subr.bf16.mxu0 %v2225_v52  ;;  %1472 = vmatprep.subr.bf16.mxu1 %v2227_v54  ;;  %v2279_v52 = vcombine.high %v929_v47, %v929_v47  ;;  %v882_v54 = vld [vmem:[#allocation2 + $0x30] sm:$0xff]  ;;  %v931_v17 = vld [vmem:[#allocation2 + $0x1b8] sm:$0x11]  ;;  %v2281_v20 = vcombine.high %v930_v16, %v930_v16  ;;  %v947_v28 = vrot.slane %v932_v26, %v3175_v34 }
 0x367   :  { %v1326_v59 = vsel %vm1300_vm11, %v2276_v51, 0  ;;  %v2232_v3 = vcombine.low %v882_v54, %v890_v55  ;;  %v954_v51 = vsub.s32 4, %v3169_v32 }
 0x368   :  { %2285 = vmatmul.mubr.msk.bf16.vlgmr.msra.gmra.mrb[12].mxu0 %vm1296_vm12, %v3235_v57  ;;  %2287 = vmatmul.mubr.msk.bf16.vlgmr.msra.gmra.mrb[8].mxu1 %vm1296_vm12, %v3235_v57 }
 0x369   :  { %1432 = vmatpush1.bf16.msra.mxu0 %v2224_v60  ;;  %1473 = vmatpush1.bf16.msra.mxu1 %v2226_v61  ;;  %v2233_v60 = vcombine.high %v882_v54, %v890_v55  ;;  %v1332_v61 = vsel %vm1300_vm11, %v2278_v53, 0  ;;  %v958_v53 = vsub.s32 5, %v3169_v32  ;;  %v966_v54 = vsub.s32 7, %v3169_v32 }
 0x36a   :  { %1433 = vmatprep.subr.bf16.mxu0 %v2241_v62  ;;  %1474 = vmatprep.subr.bf16.mxu1 %v2243_v63  ;;  %v2235_v62 = vcombine.high %v883_v56, %v891_v58  ;;  %v898_v63 = vld [vmem:[#allocation2 + $0xb0] sm:$0xff]  ;;  %v955_v55 = vrot.slane %v932_v26, %v954_v51 }
 0x36b   :  { %1463 = vmatprep.mubr.bf16.mxu0 %v2716_v5  ;;  %1504 = vmatprep.mubr.bf16.mxu1 %v2716_v5 }
 0x36d   :  { %1434 = vmatpush1.bf16.msra.mxu0 %v2240_v4  ;;  %1475 = vmatpush1.bf16.msra.mxu1 %v2242_v6  ;;  %v2234_v4 = vcombine.low %v883_v56, %v891_v58  ;;  %v2249_v6 = vcombine.high %v898_v63, %v906_v0  ;;  %v959_v58 = vrot.slane %v932_v26, %v958_v53 }
 0x36e   :  { %1435 = vmatprep.subr.bf16.mxu0 %v2257_v7  ;;  %1476 = vmatprep.subr.bf16.mxu1 %v2259_v8  ;;  %v2251_v7 = vcombine.high %v899_v1, %v907_v2  ;;  %v914_v8 = vld [vmem:[#allocation2 + $0x130] sm:$0xff] }
 0x36f   :  { %v2265_v14 = vcombine.high %v914_v8, %v922_v9  ;;  %v2264_v18 = vcombine.low %v914_v8, %v922_v9 }
 0x371   :  { %1436 = vmatpush1.bf16.msra.mxu0 %v2256_v11  ;;  %1477 = vmatpush1.bf16.msra.mxu1 %v2258_v12  ;;  %v923_v11 = vld [vmem:[#allocation2 + $0x178] sm:$0xff]  ;;  %v2248_v12 = vcombine.low %v898_v63, %v906_v0 }
 0x372   :  { %2288 = vmatprep.subr.msk.bf16.mxu0 %vm1300_vm11, %v2273_v13  ;;  %2290 = vmatprep.subr.msk.bf16.mxu1 %vm1300_vm11, %v2275_v15  ;;  %v2250_v13 = vcombine.low %v899_v1, %v907_v2  ;;  %v2267_v15 = vcombine.high %v915_v10, %v923_v11  ;;  %v2266_v19 = vcombine.low %v915_v10, %v923_v11 }
 0x375   :  { %1438 = vmatpush1.bf16.msra.mxu0 %v1314_v21  ;;  %1479 = vmatpush1.bf16.msra.mxu1 %v1320_v23  ;;  %v2280_v21 = vcombine.low %v930_v16, %v930_v16  ;;  %v2282_v23 = vcombine.low %v931_v17, %v931_v17 }
 0x376   :  { %1513 = vmatprep.subr.bf16.mxu0 %v2229_v22  ;;  %1554 = vmatprep.subr.bf16.mxu1 %v2231_v24  ;;  %v2283_v22 = vcombine.high %v931_v17, %v931_v17 }
 0x377   :  { %v1338_v24 = vsel %vm1300_vm11, %v2280_v21, 0  ;;  %v1344_v25 = vsel %vm1300_vm11, %v2282_v23, 0 }
 0x378   :  { %2289 = vmatmul.mubr.msk.bf16.vlgmr.msra.gmra.mrb[16].mxu0 %vm1296_vm12, %v3235_v57  ;;  %2291 = vmatmul.mubr.msk.bf16.vlgmr.msra.gmra.mrb[12].mxu1 %vm1296_vm12, %v3235_v57 }
 0x379   :  { %1514 = vmatpush1.bf16.msra.mxu0 %v2228_v29  ;;  %1555 = vmatpush1.bf16.msra.mxu1 %v2230_v30  ;;  %v943_v29 = vrot.slane %v932_v26, %v3181_v36  ;;  %v951_v30 = vrot.slane %v932_v26, %v3184_v37 }
 0x37a   :  { %1515 = vmatprep.subr.bf16.mxu0 %v2245_v31  ;;  %1556 = vmatprep.subr.bf16.mxu1 %v2247_v35 }
 0x37b   :  { %1545 = vmatprep.mubr.bf16.mxu0 %v2716_v5  ;;  %1586 = vmatprep.mubr.bf16.mxu1 %v2716_v5 }
 0x37d   :  { %1516 = vmatpush1.bf16.msra.mxu0 %v2244_v42  ;;  %1557 = vmatpush1.bf16.msra.mxu1 %v2246_v43 }
 0x37e   :  { %1517 = vmatprep.subr.bf16.mxu0 %v2261_v44  ;;  %1558 = vmatprep.subr.bf16.mxu1 %v2263_v45 }
 0x381   :  { %1518 = vmatpush1.bf16.msra.mxu0 %v2260_v48  ;;  %1559 = vmatpush1.bf16.msra.mxu1 %v2262_v49 }
 0x382   :  { %2292 = vmatprep.subr.msk.bf16.mxu0 %vm1300_vm11, %v2277_v50  ;;  %2294 = vmatprep.subr.msk.bf16.mxu1 %vm1300_vm11, %v2279_v52  ;;  %v962_v52 = vsub.s32 6, %v3169_v32 }
 0x384   :  { %v963_v56 = vrot.slane %v932_v26, %v962_v52 }
 0x385   :  { %1520 = vmatpush1.bf16.msra.mxu0 %v1326_v59  ;;  %1561 = vmatpush1.bf16.msra.mxu1 %v1332_v61  ;;  %v967_v59 = vrot.slane %v932_v26, %v966_v54 }
 0x386   :  { %1595 = vmatprep.subr.bf16.mxu0 %v2233_v60  ;;  %1636 = vmatprep.subr.bf16.mxu1 %v2235_v62 }
 0x388   :  { %2293 = vmatmul.mubr.msk.bf16.vlgmr.msra.gmra.mrb[20].mxu0 %vm1296_vm12, %v3235_v57  ;;  %2295 = vmatmul.mubr.msk.bf16.vlgmr.msra.gmra.mrb[16].mxu1 %vm1296_vm12, %v3235_v57 }
 0x389   :  { %1596 = vmatpush1.bf16.msra.mxu0 %v2232_v3  ;;  %1637 = vmatpush1.bf16.msra.mxu1 %v2234_v4 }
 0x38a   :  { %1597 = vmatprep.subr.bf16.mxu0 %v2249_v6  ;;  %1638 = vmatprep.subr.bf16.mxu1 %v2251_v7 }
 0x38b   :  { %1627 = vmatprep.mubr.bf16.mxu0 %v2716_v5  ;;  %1668 = vmatprep.mubr.bf16.mxu1 %v2716_v5 }
 0x38d   :  { %1598 = vmatpush1.bf16.msra.mxu0 %v2248_v12  ;;  %1639 = vmatpush1.bf16.msra.mxu1 %v2250_v13  ;;  %v933_v12 = vld [vmem:[%s3421_s8 + $0x8] sm:$0xff] }
 0x38e   :  { %1599 = vmatprep.subr.bf16.mxu0 %v2265_v14  ;;  %1640 = vmatprep.subr.bf16.mxu1 %v2267_v15  ;;  %v971_v13 = vrot.slane %v933_v12, %v3172_v33  ;;  %v979_v14 = vrot.slane %v933_v12, %v3175_v34  ;;  %v975_v15 = vrot.slane %v933_v12, %v3181_v36 }
 0x38f   :  { %v983_v16 = vrot.slane %v933_v12, %v3184_v37 }
 0x391   :  { %1600 = vmatpush1.bf16.msra.mxu0 %v2264_v18  ;;  %1641 = vmatpush1.bf16.msra.mxu1 %v2266_v19 }
 0x392   :  { %2296 = vmatprep.subr.msk.bf16.mxu0 %vm1300_vm11, %v2281_v20  ;;  %2298 = vmatprep.subr.msk.bf16.mxu1 %vm1300_vm11, %v2283_v22 }
 0x395   :  { %1602 = vmatpush1.bf16.msra.mxu0 %v1338_v24  ;;  %1643 = vmatpush1.bf16.msra.mxu1 %v1344_v25 }
 0x398   :  { %2297 = vmatmul.mubr.msk.bf16.vlgmr.msra.gmra.mrb[24].mxu0 %vm1296_vm12, %v3235_v57  ;;  %2299 = vmatmul.mubr.msk.bf16.vlgmr.msra.gmra.mrb[20].mxu1 %vm1296_vm12, %v3235_v57 }
 0x43b   :  { %v1383_v31 = vpop.f32.mrb[12].mxu0  ;;  %v1424_v38 = vpop.f32.mrb[8].mxu1 }
 0x43c   :  { %v3278_v35 = vadd.f32 %v1383_v31, %v939_v27  ;;  %v1385_v39 = vpop.f32.mrb[13].mxu0  ;;  %v3280_v40 = vadd.f32 %v1424_v38, %v947_v28  ;;  %v1426_v41 = vpop.f32.mrb[9].mxu1  ;;  %v991_v31 = vrot.slane %v933_v12, %v958_v53  ;;  %v999_v38 = vrot.slane %v933_v12, %v966_v54 }
 0x43d   :  { %v3282_v57 = vadd.f32 %v1385_v39, %v943_v29  ;;  %v1387_v42 = vpop.f32.mrb[14].mxu0  ;;  %v3285_v44 = vadd.f32 %v1426_v41, %v951_v30  ;;  %v1428_v45 = vpop.f32.mrb[10].mxu1  ;;  %v987_v29 = vrot.slane %v933_v12, %v954_v51  ;;  %v995_v30 = vrot.slane %v933_v12, %v962_v52 }
 0x43e   :  { %v1677_v43 = vmax.f32 %v3278_v35, 0.0  ;;  %v1388_v46 = vpop.f32.mrb[15].mxu0  ;;  %v1679_v47 = vmax.f32 %v3280_v40, 0.0  ;;  %v1429_v49 = vpop.f32.mrb[11].mxu1 }
 0x43f   :  { %v1678_v48 = vmax.f32 %v3282_v57, 0.0  ;;  %v1680_v50 = vmax.f32 %v3285_v44, 0.0 }
 0x44b   :  { %v1465_v60 = vpop.f32.mrb[16].mxu0  ;;  %v1506_v62 = vpop.f32.mrb[12].mxu1 }
 0x44c   :  { %v3294_v61 = vadd.f32 %v1465_v60, %v955_v55  ;;  %v1467_v63 = vpop.f32.mrb[17].mxu0  ;;  %v3296_v0 = vadd.f32 %v1506_v62, %v963_v56  ;;  %v1508_v2 = vpop.f32.mrb[13].mxu1 }
 0x44d   :  { %v3298_v1 = vadd.f32 %v1467_v63, %v959_v58  ;;  %v1469_v3 = vpop.f32.mrb[18].mxu0  ;;  %v3301_v6 = vadd.f32 %v1508_v2, %v967_v59  ;;  %v1510_v32 = vpop.f32.mrb[14].mxu1 }
 0x44e   :  { %v1681_v4 = vmax.f32 %v3294_v61, 0.0  ;;  %v1470_v7 = vpop.f32.mrb[19].mxu0  ;;  %v1683_v8 = vmax.f32 %v3296_v0, 0.0  ;;  %v1511_v10 = vpop.f32.mrb[15].mxu1 }
 0x44f   :  { %v1682_v9 = vmax.f32 %v3298_v1, 0.0  ;;  %v1684_v11 = vmax.f32 %v3301_v6, 0.0 }
 0x45b   :  { %v1547_v17 = vpop.f32.mrb[20].mxu0  ;;  %v1588_v19 = vpop.f32.mrb[16].mxu1 }
 0x45c   :  { %v3313_v18 = vadd.f32 %v1547_v17, %v971_v13  ;;  %v1549_v20 = vpop.f32.mrb[21].mxu0  ;;  %v3315_v21 = vadd.f32 %v1588_v19, %v979_v14  ;;  %v1590_v23 = vpop.f32.mrb[17].mxu1 }
 0x45d   :  { %v3317_v22 = vadd.f32 %v1549_v20, %v975_v15  ;;  %v1551_v24 = vpop.f32.mrb[22].mxu0  ;;  %v3320_v33 = vadd.f32 %v1590_v23, %v983_v16  ;;  %v1592_v34 = vpop.f32.mrb[18].mxu1 }
 0x45e   :  { %v1685_v25 = vmax.f32 %v3313_v18, 0.0  ;;  %v1552_v26 = vpop.f32.mrb[23].mxu0  ;;  %v1687_v36 = vmax.f32 %v3315_v21, 0.0  ;;  %v1593_v27 = vpop.f32.mrb[19].mxu1 }
 0x45f   :  { %v1686_v37 = vmax.f32 %v3317_v22, 0.0  ;;  %v1688_v28 = vmax.f32 %v3320_v33, 0.0 }
 0x46b   :  { %v1629_v39 = vpop.f32.mrb[24].mxu0  ;;  %v1670_v42 = vpop.f32.mrb[20].mxu1 }
 0x46c   :  { %v3325_v41 = vadd.f32 %v1629_v39, %v987_v29  ;;  %v1631_v45 = vpop.f32.mrb[25].mxu0  ;;  %v3327_v46 = vadd.f32 %v1670_v42, %v995_v30  ;;  %v1672_v55 = vpop.f32.mrb[21].mxu1 }
 0x46d   :  { %v3329_v49 = vadd.f32 %v1631_v45, %v991_v31  ;;  %v1633_v56 = vpop.f32.mrb[26].mxu0  ;;  %v3332_v59 = vadd.f32 %v1672_v55, %v999_v38  ;;  %v1674_v60 = vpop.f32.mrb[22].mxu1 }
 0x46e   :  { %v1689_v58 = vmax.f32 %v3325_v41, 0.0  ;;  %v1634_v51 = vpop.f32.mrb[27].mxu0  ;;  %v1691_v52 = vmax.f32 %v3327_v46, 0.0  ;;  %v1675_v54 = vpop.f32.mrb[23].mxu1 }
 0x46f   :  { %v1690_v53 = vmax.f32 %v3329_v49, 0.0  ;;  %v1692_v62 = vmax.f32 %v3332_v59, 0.0 }
 0x470   :  { %2711 = dma.done.wait [#allocation4 + $0x1], 16000 }
 0x471   :  { %2712 = vsyncadd [#allocation4 + $0x1], 4294951296  ;;  %v1698_v63 = vpack.c.bf16 %v1678_v48, %v1678_v48  ;;  %v1700_v2 = vpack.c.bf16 %v1680_v50, %v1680_v50  ;;  %v1721_v3 = vld [vmem:[#allocation3 + $0x40] sm:$0xff]  ;;  %v1722_v12 = vld [vmem:[#allocation3 + $0x48] sm:$0xff]  ;;  %v1704_v35 = vpack.c.bf16 %v1684_v11, %v1684_v11  ;;  %v1708_v61 = vpack.c.bf16 %v1688_v28, %v1688_v28 }
 0x472   :  { %v1737_v32 = vld [vmem:[#allocation3 + $0xc0] sm:$0xff]  ;;  %2388 = vmatprep.subr.bf16.mxu0 %v1721_v3  ;;  %v1738_v13 = vld [vmem:[#allocation3 + $0xc8] sm:$0xff]  ;;  %v1723_v14 = vld [vmem:[#allocation3 + $0x50] sm:$0xff]  ;;  %v1699_v3 = vpack.c.bf16 %v1679_v47, %v1679_v47  ;;  %v1712_v18 = vpack.c.bf16 %v1692_v62, %v1692_v62  ;;  %vm1845_vm13 = vcmask 654336  }
 0x473   :  { %1881 = vmatprep.mubr.bf16.mxu0 %v1698_v63  ;;  %1921 = vmatprep.mubr.bf16.mxu1 %v1700_v2  ;;  %v1713_v7 = vld [vmem:[#allocation3] sm:$0xff]  ;;  %v1714_v57 = vld [vmem:[#allocation3 + $0x8] sm:$0xff]  ;;  %v1739_v44 = vld [vmem:[#allocation3 + $0xd0] sm:$0xff]  ;;  %v1697_v2 = vpack.c.bf16 %v1677_v43, %v1677_v43 }
 0x474   :  { %2410 = vmatprep.subr.bf16.mxu1 %v1737_v32  ;;  %v1729_v10 = vld [vmem:[#allocation3 + $0x80] sm:$0xff]  ;;  %2389 = vmatpush3.bf16.msra.mxu0 %v1713_v7  ;;  %v1730_v48 = vld [vmem:[#allocation3 + $0x88] sm:$0xff]  ;;  %v1715_v50 = vld [vmem:[#allocation3 + $0x10] sm:$0xff] }
 0x475   :  { %2411 = vmatpush3.bf16.msra.mxu1 %v1729_v10  ;;  %2390 = vmatprep.subr.bf16.mxu0 %v1722_v12  ;;  %v1731_v15 = vld [vmem:[#allocation3 + $0x90] sm:$0xff]  ;;  %v1724_v16 = vld [vmem:[#allocation3 + $0x58] sm:$0xff]  ;;  %v1725_v23 = vld [vmem:[#allocation3 + $0x60] sm:$0xff] }
 0x476   :  { %2412 = vmatprep.subr.bf16.mxu1 %v1738_v13  ;;  %v1740_v17 = vld [vmem:[#allocation3 + $0xd8] sm:$0xff]  ;;  %v1741_v24 = vld [vmem:[#allocation3 + $0xe0] sm:$0xff]  ;;  %v1726_v27 = vld [vmem:[#allocation3 + $0x68] sm:$0xff]  ;;  %v1702_v13 = vpack.c.bf16 %v1682_v9, %v1682_v9 }
 0x477   :  { %v1716_v19 = vld [vmem:[#allocation3 + $0x18] sm:$0xff]  ;;  %v1717_v34 = vld [vmem:[#allocation3 + $0x20] sm:$0xff]  ;;  %v1742_v29 = vld [vmem:[#allocation3 + $0xe8] sm:$0xff] }
 0x478   :  { %2391 = vmatpush3.bf16.msra.mxu0 %v1714_v57  ;;  %v1732_v20 = vld [vmem:[#allocation3 + $0x98] sm:$0xff]  ;;  %v1733_v26 = vld [vmem:[#allocation3 + $0xa0] sm:$0xff]  ;;  %v1718_v30 = vld [vmem:[#allocation3 + $0x28] sm:$0xff] }
 0x479   :  { %2413 = vmatpush3.bf16.msra.mxu1 %v1730_v48  ;;  %2392 = vmatprep.subr.bf16.mxu0 %v1723_v14  ;;  %v1734_v31 = vld [vmem:[#allocation3 + $0xa8] sm:$0xff]  ;;  %v1727_v38 = vld [vmem:[#allocation3 + $0x70] sm:$0xff]  ;;  %v1728_v55 = vld [vmem:[#allocation3 + $0x78] sm:$0xff] }
 0x47a   :  { %2414 = vmatprep.subr.bf16.mxu1 %v1739_v44  ;;  %v1743_v39 = vld [vmem:[#allocation3 + $0xf0] sm:$0xff]  ;;  %v1744_v56 = vld [vmem:[#allocation3 + $0xf8] sm:$0xff]  ;;  %v1753_v54 = vld [vmem:[#allocation3 + $0x140] sm:$0xff] }
 0x47b   :  { %v1719_v42 = vld [vmem:[#allocation3 + $0x30] sm:$0xff]  ;;  %v1720_v60 = vld [vmem:[#allocation3 + $0x38] sm:$0xff]  ;;  %v1769_v63 = vld [vmem:[#allocation3 + $0x1c0] sm:$0xff] }
 0x47c   :  { %2393 = vmatpush3.bf16.msra.mxu0 %v1715_v50  ;;  %v1735_v45 = vld [vmem:[#allocation3 + $0xb0] sm:$0xff]  ;;  %v1736_v51 = vld [vmem:[#allocation3 + $0xb8] sm:$0xff]  ;;  %v1745_v32 = vld [vmem:[#allocation3 + $0x100] sm:$0xff] }
 0x47d   :  { %2415 = vmatpush3.bf16.msra.mxu1 %v1731_v15  ;;  %2394 = vmatprep.subr.bf16.mxu0 %v1724_v16  ;;  %v1761_v7 = vld [vmem:[#allocation3 + $0x180] sm:$0xff]  ;;  %v1754_v10 = vld [vmem:[#allocation3 + $0x148] sm:$0xff]  ;;  %v1755_v47 = vld [vmem:[#allocation3 + $0x150] sm:$0xff] }
 0x47e   :  { %2416 = vmatprep.subr.bf16.mxu1 %v1740_v17  ;;  %v1770_v12 = vld [vmem:[#allocation3 + $0x1c8] sm:$0xff]  ;;  %v1771_v57 = vld [vmem:[#allocation3 + $0x1d0] sm:$0xff]  ;;  %v1756_v9 = vld [vmem:[#allocation3 + $0x158] sm:$0xff] }
 0x47f   :  { %v1746_v40 = vld [vmem:[#allocation3 + $0x108] sm:$0xff]  ;;  %v1747_v1 = vld [vmem:[#allocation3 + $0x110] sm:$0xff]  ;;  %v1772_v11 = vld [vmem:[#allocation3 + $0x1d8] sm:$0xff] }
 0x480   :  { %2395 = vmatpush3.bf16.msra.mxu0 %v1716_v19  ;;  %v1762_v43 = vld [vmem:[#allocation3 + $0x188] sm:$0xff]  ;;  %v1763_v6 = vld [vmem:[#allocation3 + $0x190] sm:$0xff]  ;;  %v1748_v48 = vld [vmem:[#allocation3 + $0x118] sm:$0xff] }
 0x481   :  { %2417 = vmatpush3.bf16.msra.mxu1 %v1732_v20  ;;  %2396 = vmatprep.subr.bf16.mxu0 %v1725_v23  ;;  %v1764_v14 = vld [vmem:[#allocation3 + $0x198] sm:$0xff]  ;;  %v1757_v44 = vld [vmem:[#allocation3 + $0x160] sm:$0xff]  ;;  %v1758_v17 = vld [vmem:[#allocation3 + $0x168] sm:$0xff] }
 0x482   :  { %2418 = vmatprep.subr.bf16.mxu1 %v1741_v24  ;;  %v1773_v50 = vld [vmem:[#allocation3 + $0x1e0] sm:$0xff]  ;;  %v1774_v19 = vld [vmem:[#allocation3 + $0x1e8] sm:$0xff]  ;;  %v1759_v24 = vld [vmem:[#allocation3 + $0x170] sm:$0xff] }
 0x483   :  { %v1749_v15 = vld [vmem:[#allocation3 + $0x120] sm:$0xff]  ;;  %v1750_v20 = vld [vmem:[#allocation3 + $0x128] sm:$0xff]  ;;  %v1779_v22 = vld [vmem:[#allocation3 + $0x210] sm:$0xff] }
 0x484   :  { %2397 = vmatpush3.bf16.msra.mxu0 %v1717_v34  ;;  %v1765_v16 = vld [vmem:[#allocation3 + $0x1a0] sm:$0xff]  ;;  %v1766_v23 = vld [vmem:[#allocation3 + $0x1a8] sm:$0xff]  ;;  %v1775_v34 = vld [vmem:[#allocation3 + $0x1f0] sm:$0xff] }
 0x485   :  { %2419 = vmatpush3.bf16.msra.mxu1 %v1733_v26  ;;  %2398 = vmatprep.subr.bf16.mxu0 %v1726_v27  ;;  %v1751_v26 = vld [vmem:[#allocation3 + $0x130] sm:$0xff]  ;;  %v1778_v0 = vld [vmem:[#allocation3 + $0x208] sm:$0xff]  ;;  %v1804_v28 = vld [vmem:[#allocation3 + $0x2d8] sm:$0xff] }
 0x486   :  { %2420 = vmatprep.subr.bf16.mxu1 %v1742_v29  ;;  %v1767_v27 = vld [vmem:[#allocation3 + $0x1b0] sm:$0xff]  ;;  %v1760_v29 = vld [vmem:[#allocation3 + $0x178] sm:$0xff]  ;;  %v1810_v21 = vld [vmem:[#allocation3 + $0x308] sm:$0xff] }
 0x487   :  { %v1795_v33 = vld [vmem:[#allocation3 + $0x290] sm:$0xff]  ;;  %v1812_v62 = vld [vmem:[#allocation3 + $0x318] sm:$0xff] }
 0x488   :  { %2399 = vmatpush3.bf16.msra.mxu0 %v1718_v30  ;;  %v1776_v30 = vld [vmem:[#allocation3 + $0x1f8] sm:$0xff]  ;;  %v1811_v49 = vld [vmem:[#allocation3 + $0x310] sm:$0xff] }
 0x489   :  { %2421 = vmatpush3.bf16.msra.mxu1 %v1734_v31  ;;  %2400 = vmatprep.subr.bf16.mxu0 %v1727_v38  ;;  %v1752_v31 = vld [vmem:[#allocation3 + $0x138] sm:$0xff]  ;;  %v1827_v59 = vld [vmem:[#allocation3 + $0x390] sm:$0xff] }
 0x48a   :  { %2422 = vmatprep.subr.bf16.mxu1 %v1743_v39  ;;  %v1768_v38 = vld [vmem:[#allocation3 + $0x1b8] sm:$0xff]  ;;  %v1785_v39 = vld [vmem:[#allocation3 + $0x240] sm:$0xff] }
 0x48b   :  { %v1836_v41 = vld [vmem:[#allocation3 + $0x3d8] sm:$0xff] }
 0x48c   :  { %2401 = vmatpush3.bf16.msra.mxu0 %v1719_v42  ;;  %v1801_v42 = vld [vmem:[#allocation3 + $0x2c0] sm:$0xff] }
 0x48d   :  { %2423 = vmatpush3.bf16.msra.mxu1 %v1735_v45  ;;  %2402 = vmatprep.subr.bf16.mxu0 %v1728_v55  ;;  %v1701_v45 = vpack.c.bf16 %v1681_v4, %v1681_v4  ;;  %v1703_v55 = vpack.c.bf16 %v1683_v8, %v1683_v8  ;;  %v1794_v4 = vld [vmem:[#allocation3 + $0x288] sm:$0xff]  ;;  %v1787_v8 = vld [vmem:[#allocation3 + $0x250] sm:$0xff] }
 0x48e   :  { %2424 = vmatprep.subr.bf16.mxu1 %v1744_v56  ;;  %v1777_v56 = vld [vmem:[#allocation3 + $0x200] sm:$0xff] }
 0x490   :  { %2403 = vmatpush3.bf16.msra.mxu0 %v1720_v60  ;;  %v1793_v60 = vld [vmem:[#allocation3 + $0x280] sm:$0xff] }
 0x491   :  { %2425 = vmatpush3.bf16.msra.mxu1 %v1736_v51  ;;  %2432 = vmatprep.subr.bf16.mxu0 %v1753_v54  ;;  %v1786_v51 = vld [vmem:[#allocation3 + $0x248] sm:$0xff] }
 0x492   :  { %2454 = vmatprep.subr.bf16.mxu1 %v1769_v63  ;;  %v1802_v54 = vld [vmem:[#allocation3 + $0x2c8] sm:$0xff]  ;;  %v1706_v63 = vpack.c.bf16 %v1686_v37, %v1686_v37  ;;  %v1788_v37 = vld [vmem:[#allocation3 + $0x258] sm:$0xff] }
 0x493   :  { %1882 = vmatmul.mubr.bf16.vlgmr.msra.gmra.mrb[28].mxu0 %v1697_v2  ;;  %v1803_v2 = vld [vmem:[#allocation3 + $0x2d0] sm:$0xff] }
 0x494   :  { %1922 = vmatmul.mubr.bf16.vlgmr.msra.gmra.mrb[24].mxu1 %v1699_v3  ;;  %2433 = vmatpush3.bf16.msra.mxu0 %v1745_v32  ;;  %v1780_v3 = vld [vmem:[#allocation3 + $0x218] sm:$0xff] }
 0x495   :  { %2455 = vmatpush3.bf16.msra.mxu1 %v1761_v7  ;;  %2434 = vmatprep.subr.bf16.mxu0 %v1754_v10  ;;  %v1796_v32 = vld [vmem:[#allocation3 + $0x298] sm:$0xff]  ;;  %v1789_v7 = vld [vmem:[#allocation3 + $0x260] sm:$0xff] }
 0x496   :  { %2456 = vmatprep.subr.bf16.mxu1 %v1770_v12  ;;  %1961 = vmatprep.mubr.bf16.mxu0 %v1702_v13  ;;  %v1805_v10 = vld [vmem:[#allocation3 + $0x2e0] sm:$0xff] }
 0x497   :  { %2001 = vmatprep.mubr.bf16.mxu1 %v1704_v35  ;;  %v1781_v12 = vld [vmem:[#allocation3 + $0x220] sm:$0xff]  ;;  %v1790_v35 = vld [vmem:[#allocation3 + $0x268] sm:$0xff] }
 0x498   :  { %2435 = vmatpush3.bf16.msra.mxu0 %v1746_v40  ;;  %v1797_v13 = vld [vmem:[#allocation3 + $0x2a0] sm:$0xff]  ;;  %v1806_v40 = vld [vmem:[#allocation3 + $0x2e8] sm:$0xff] }
 0x499   :  { %2457 = vmatpush3.bf16.msra.mxu1 %v1762_v43  ;;  %2436 = vmatprep.subr.bf16.mxu0 %v1755_v47  ;;  %v1782_v43 = vld [vmem:[#allocation3 + $0x228] sm:$0xff] }
 0x49a   :  { %2458 = vmatprep.subr.bf16.mxu1 %v1771_v57  ;;  %v1798_v47 = vld [vmem:[#allocation3 + $0x2a8] sm:$0xff]  ;;  %v1791_v57 = vld [vmem:[#allocation3 + $0x270] sm:$0xff] }
 0x49c   :  { %2437 = vmatpush3.bf16.msra.mxu0 %v1747_v1  ;;  %v1807_v1 = vld [vmem:[#allocation3 + $0x2f0] sm:$0xff] }
 0x49d   :  { %2459 = vmatpush3.bf16.msra.mxu1 %v1763_v6  ;;  %2438 = vmatprep.subr.bf16.mxu0 %v1756_v9  ;;  %v1783_v6 = vld [vmem:[#allocation3 + $0x230] sm:$0xff] }
 0x49e   :  { %2460 = vmatprep.subr.bf16.mxu1 %v1772_v11  ;;  %v1799_v9 = vld [vmem:[#allocation3 + $0x2b0] sm:$0xff]  ;;  %v1792_v11 = vld [vmem:[#allocation3 + $0x278] sm:$0xff] }
 0x4a0   :  { %2439 = vmatpush3.bf16.msra.mxu0 %v1748_v48  ;;  %v1808_v48 = vld [vmem:[#allocation3 + $0x2f8] sm:$0xff] }
 0x4a1   :  { %2461 = vmatpush3.bf16.msra.mxu1 %v1764_v14  ;;  %2440 = vmatprep.subr.bf16.mxu0 %v1757_v44  ;;  %v1784_v14 = vld [vmem:[#allocation3 + $0x238] sm:$0xff] }
 0x4a2   :  { %2462 = vmatprep.subr.bf16.mxu1 %v1773_v50  ;;  %v1800_v44 = vld [vmem:[#allocation3 + $0x2b8] sm:$0xff]  ;;  %v1817_v50 = vld [vmem:[#allocation3 + $0x340] sm:$0xff] }
 0x4a4   :  { %2441 = vmatpush3.bf16.msra.mxu0 %v1749_v15  ;;  %v1705_v15 = vpack.c.bf16 %v1685_v25, %v1685_v25  ;;  %v1826_v25 = vld [vmem:[#allocation3 + $0x388] sm:$0xff] }
 0x4a5   :  { %2463 = vmatpush3.bf16.msra.mxu1 %v1765_v16  ;;  %2442 = vmatprep.subr.bf16.mxu0 %v1758_v17  ;;  %v1707_v16 = vpack.c.bf16 %v1687_v36, %v1687_v36  ;;  %v1809_v17 = vld [vmem:[#allocation3 + $0x300] sm:$0xff]  ;;  %v1819_v36 = vld [vmem:[#allocation3 + $0x350] sm:$0xff] }
 0x4a6   :  { %2464 = vmatprep.subr.bf16.mxu1 %v1774_v19  ;;  %v1825_v19 = vld [vmem:[#allocation3 + $0x380] sm:$0xff] }
 0x4a8   :  { %2443 = vmatpush3.bf16.msra.mxu0 %v1750_v20  ;;  %v1818_v20 = vld [vmem:[#allocation3 + $0x348] sm:$0xff] }
 0x4a9   :  { %2465 = vmatpush3.bf16.msra.mxu1 %v1766_v23  ;;  %2444 = vmatprep.subr.bf16.mxu0 %v1759_v24  ;;  %v1710_v23 = vpack.c.bf16 %v1690_v53, %v1690_v53  ;;  %v1820_v53 = vld [vmem:[#allocation3 + $0x358] sm:$0xff] }
 0x4aa   :  { %2466 = vmatprep.subr.bf16.mxu1 %v1775_v34  ;;  %v1828_v24 = vld [vmem:[#allocation3 + $0x398] sm:$0xff]  ;;  %v1821_v34 = vld [vmem:[#allocation3 + $0x360] sm:$0xff] }
 0x4ac   :  { %2445 = vmatpush3.bf16.msra.mxu0 %v1751_v26  ;;  %v1813_v26 = vld [vmem:[#allocation3 + $0x320] sm:$0xff] }
 0x4ad   :  { %2467 = vmatpush3.bf16.msra.mxu1 %v1767_v27  ;;  %2446 = vmatprep.subr.bf16.mxu0 %v1760_v29  ;;  %v1829_v27 = vld [vmem:[#allocation3 + $0x3a0] sm:$0xff]  ;;  %v1822_v29 = vld [vmem:[#allocation3 + $0x368] sm:$0xff] }
 0x4ae   :  { %2468 = vmatprep.subr.bf16.mxu1 %v1776_v30  ;;  %v1814_v30 = vld [vmem:[#allocation3 + $0x328] sm:$0xff] }
 0x4b0   :  { %2447 = vmatpush3.bf16.msra.mxu0 %v1752_v31  ;;  %v1830_v31 = vld [vmem:[#allocation3 + $0x3a8] sm:$0xff] }
 0x4b1   :  { %2469 = vmatpush3.bf16.msra.mxu1 %v1768_v38  ;;  %2476 = vmatprep.subr.bf16.mxu0 %v1785_v39  ;;  %v1823_v38 = vld [vmem:[#allocation3 + $0x370] sm:$0xff] }
 0x4b2   :  { %2498 = vmatprep.subr.bf16.mxu1 %v1801_v42  ;;  %v1815_v39 = vld [vmem:[#allocation3 + $0x330] sm:$0xff] }
 0x4b3   :  { %1962 = vmatmul.mubr.bf16.vlgmr.msra.gmra.mrb[32].mxu0 %v1701_v45  ;;  %v1831_v42 = vld [vmem:[#allocation3 + $0x3b0] sm:$0xff]  ;;  %v1824_v45 = vld [vmem:[#allocation3 + $0x378] sm:$0xff] }
 0x4b4   :  { %2002 = vmatmul.mubr.bf16.vlgmr.msra.gmra.mrb[28].mxu1 %v1703_v55  ;;  %2477 = vmatpush3.bf16.msra.mxu0 %v1777_v56  ;;  %v1816_v55 = vld [vmem:[#allocation3 + $0x338] sm:$0xff] }
 0x4b5   :  { %2499 = vmatpush3.bf16.msra.mxu1 %v1793_v60  ;;  %2478 = vmatprep.subr.bf16.mxu0 %v1786_v51  ;;  %v1832_v56 = vld [vmem:[#allocation3 + $0x3b8] sm:$0xff]  ;;  %v1709_v60 = vpack.c.bf16 %v1689_v58, %v1689_v58  ;;  %v1833_v51 = vld [vmem:[#allocation3 + $0x3c0] sm:$0xff] }
 0x4b6   :  { %2500 = vmatprep.subr.bf16.mxu1 %v1802_v54  ;;  %2041 = vmatprep.mubr.bf16.mxu0 %v1706_v63  ;;  %v1834_v54 = vld [vmem:[#allocation3 + $0x3c8] sm:$0xff]  ;;  %v1835_v63 = vld [vmem:[#allocation3 + $0x3d0] sm:$0xff]  ;;  %v1837_v58 = vld [vmem:[#allocation3 + $0x3e0] sm:$0xff] }
 0x4b7   :  { %2081 = vmatprep.mubr.bf16.mxu1 %v1708_v61  ;;  %v1711_v61 = vpack.c.bf16 %v1691_v52, %v1691_v52 }
 0x4b8   :  { %2479 = vmatpush3.bf16.msra.mxu0 %v1778_v0 }
 0x4b9   :  { %2501 = vmatpush3.bf16.msra.mxu1 %v1794_v4  ;;  %2480 = vmatprep.subr.bf16.mxu0 %v1787_v8  ;;  %v2300_v8 = vld [vmem:[%s3422_s9] ss:$0 sm:$0xff]  ;;  %s2723_s9 = smov [#allocation5]  }
 0x4ba   :  { %2502 = vmatprep.subr.bf16.mxu1 %v1803_v2  ;;  %s2176_s22 = sshll.u32 %s2723_s9, 4  ;;  %s2177_s22 = int_to_ptr.vmem [resolvable:$true] %s2176_s22 }
 0x4bb   :  { %s2687_s23 = scalar_lea.vmem %s2177_s22, 64  ;;  %p2692_p9 = scmp.lt.s32.totalorder %s2177_s22, %s2177_s22 }
 0x4bc   :  { %2481 = vmatpush3.bf16.msra.mxu0 %v1779_v22  ;;  %p2688_p8 = scmp.ne.s32.totalorder %s2177_s22, %s2687_s23  ;;  %p2693_p10 = scmp.lt.s32.totalorder %s2687_s23, %s2687_s23 }
 0x4bd   :  { %2503 = vmatpush3.bf16.msra.mxu1 %v1795_v33  ;;  %2482 = vmatprep.subr.bf16.mxu0 %v1788_v37 }
 0x4be   :  { %2504 = vmatprep.subr.bf16.mxu1 %v1804_v28  ;;  %p2694_p11 = por %p2693_p10, %p2692_p9 }
 0x4c0   :  { %2483 = vmatpush3.bf16.msra.mxu0 %v1780_v3  ;;  %p2695_p12 = pnand %p2694_p11, %p2688_p8 }
 0x4c1   :  { %2505 = vmatpush3.bf16.msra.mxu1 %v1796_v32  ;;  %2484 = vmatprep.subr.bf16.mxu0 %v1789_v7 }
 0x4c2   :  { %2506 = vmatprep.subr.bf16.mxu1 %v1805_v10 }
 0x4c4   :  { %2485 = vmatpush3.bf16.msra.mxu0 %v1781_v12 }
 0x4c5   :  { %2507 = vmatpush3.bf16.msra.mxu1 %v1797_v13  ;;  %2486 = vmatprep.subr.bf16.mxu0 %v1790_v35 }
 0x4c6   :  { %2508 = vmatprep.subr.bf16.mxu1 %v1806_v40 }
 0x4c8   :  { %2487 = vmatpush3.bf16.msra.mxu0 %v1782_v43 }
 0x4c9   :  { %2509 = vmatpush3.bf16.msra.mxu1 %v1798_v47  ;;  %2488 = vmatprep.subr.bf16.mxu0 %v1791_v57 }
 0x4ca   :  { %2510 = vmatprep.subr.bf16.mxu1 %v1807_v1 }
 0x4cc   :  { %2489 = vmatpush3.bf16.msra.mxu0 %v1783_v6 }
 0x4cd   :  { %2511 = vmatpush3.bf16.msra.mxu1 %v1799_v9  ;;  %2490 = vmatprep.subr.bf16.mxu0 %v1792_v11 }
 0x4ce   :  { %2512 = vmatprep.subr.bf16.mxu1 %v1808_v48 }
 0x4d0   :  { %2491 = vmatpush3.bf16.msra.mxu0 %v1784_v14 }
 0x4d1   :  { %2513 = vmatpush3.bf16.msra.mxu1 %v1800_v44  ;;  %2520 = vmatprep.subr.bf16.mxu0 %v1817_v50 }
 0x4d2   :  { %2129 = vmatprep.subr.bf16.mxu1 %v2716_v5 }
 0x4d3   :  { %2042 = vmatmul.mubr.bf16.vlgmr.msra.gmra.mrb[36].mxu0 %v1705_v15 }
 0x4d4   :  { %2082 = vmatmul.mubr.bf16.vlgmr.msra.gmra.mrb[32].mxu1 %v1707_v16  ;;  %2521 = vmatpush3.bf16.msra.mxu0 %v1809_v17 }
 0x4d5   :  { %2130 = vmatpush1.bf16.msra.mxu1 %v1825_v19  ;;  %2522 = vmatprep.subr.bf16.mxu0 %v1818_v20 }
 0x4d6   :  { %2131 = vmatprep.subr.bf16.mxu1 %v2716_v5  ;;  %2121 = vmatprep.mubr.bf16.mxu0 %v1710_v23 }
 0x4d7   :  { %2301 = vmatprep.mubr.msk.bf16.mxu1 %vm1845_vm13, %v1712_v18 }
 0x4d8   :  { %2523 = vmatpush3.bf16.msra.mxu0 %v1810_v21 }
 0x4d9   :  { %2132 = vmatpush1.bf16.msra.mxu1 %v1826_v25  ;;  %2524 = vmatprep.subr.bf16.mxu0 %v1819_v36 }
 0x4da   :  { %2133 = vmatprep.subr.bf16.mxu1 %v2716_v5 }
 0x4dc   :  { %2525 = vmatpush3.bf16.msra.mxu0 %v1811_v49 }
 0x4dd   :  { %2134 = vmatpush1.bf16.msra.mxu1 %v1827_v59  ;;  %2526 = vmatprep.subr.bf16.mxu0 %v1820_v53 }
 0x4de   :  { %2135 = vmatprep.subr.bf16.mxu1 %v2716_v5 }
 0x4e0   :  { %2527 = vmatpush3.bf16.msra.mxu0 %v1812_v62 }
 0x4e1   :  { %2136 = vmatpush1.bf16.msra.mxu1 %v1828_v24  ;;  %2528 = vmatprep.subr.bf16.mxu0 %v1821_v34 }
 0x4e2   :  { %2137 = vmatprep.subr.bf16.mxu1 %v2716_v5 }
 0x4e4   :  { %2529 = vmatpush3.bf16.msra.mxu0 %v1813_v26 }
 0x4e5   :  { %2138 = vmatpush1.bf16.msra.mxu1 %v1829_v27  ;;  %2530 = vmatprep.subr.bf16.mxu0 %v1822_v29 }
 0x4e6   :  { %2139 = vmatprep.subr.bf16.mxu1 %v2716_v5 }
 0x4e8   :  { %2531 = vmatpush3.bf16.msra.mxu0 %v1814_v30 }
 0x4e9   :  { %2140 = vmatpush1.bf16.msra.mxu1 %v1830_v31  ;;  %2532 = vmatprep.subr.bf16.mxu0 %v1823_v38 }
 0x4ea   :  { %2141 = vmatprep.subr.bf16.mxu1 %v2716_v5 }
 0x4ec   :  { %2533 = vmatpush3.bf16.msra.mxu0 %v1815_v39 }
 0x4ed   :  { %2142 = vmatpush1.bf16.msra.mxu1 %v1831_v42  ;;  %2534 = vmatprep.subr.bf16.mxu0 %v1824_v45 }
 0x4ee   :  { %2143 = vmatprep.subr.bf16.mxu1 %v2716_v5 }
 0x4f0   :  { %2535 = vmatpush3.bf16.msra.mxu0 %v1816_v55 }
 0x4f1   :  { %2144 = vmatpush1.bf16.msra.mxu1 %v1832_v56 }
 0x4f2   :  { %2145 = vmatprep.subr.bf16.mxu1 %v2716_v5 }
 0x4f3   :  { %2122 = vmatmul.mubr.bf16.vlgmr.msra.gmra.mrb[40].mxu0 %v1709_v60 }
 0x4f5   :  { %2146 = vmatpush1.bf16.msra.mxu1 %v1833_v51 }
 0x4f6   :  { %2147 = vmatprep.subr.bf16.mxu1 %v2716_v5 }
 0x4f9   :  { %2148 = vmatpush1.bf16.msra.mxu1 %v1834_v54 }
 0x4fa   :  { %2149 = vmatprep.subr.bf16.mxu1 %v2716_v5 }
 0x4fd   :  { %2150 = vmatpush1.bf16.msra.mxu1 %v1835_v63 }
 0x4fe   :  { %2151 = vmatprep.subr.bf16.mxu1 %v2716_v5 }
 0x501   :  { %2152 = vmatpush1.bf16.msra.mxu1 %v1836_v41 }
 0x502   :  { %2153 = vmatprep.subr.bf16.mxu1 %v2716_v5 }
 0x505   :  { %2154 = vmatpush1.bf16.msra.mxu1 %v1837_v58 }
 0x508   :  { %2162 = vmatmul.mubr.bf16.vlgmr.msra.gmra.mrb[36].mxu1 %v1711_v61 }
 0x566   :  { %v2404_v0 = vpop.f32.mrb[28].mxu0 }
 0x567   :  { %v2426_v4 = vpop.f32.mrb[24].mxu1  ;;  %v2405_v2 = vpop.f32.mrb[29].mxu0 }
 0x568   :  { %v2427_v22 = vpop.f32.mrb[25].mxu1  ;;  %v2406_v33 = vadd.f32 %v2405_v2, %v2404_v0  ;;  %v2407_v3 = vpop.f32.mrb[30].mxu0 }
 0x569   :  { %v2428_v37 = vadd.f32 %v2427_v22, %v2426_v4  ;;  %v2429_v28 = vpop.f32.mrb[26].mxu1  ;;  %v2408_v32 = vpop.f32.mrb[31].mxu0 }
 0x56a   :  { %v2430_v5 = vpop.f32.mrb[27].mxu1  ;;  %v1884_v7 = vadd.f32 %v2406_v33, %v2300_v8 }
 0x56c   :  { %v1924_v46 = vadd.f32 %v2428_v37, %v1884_v7 }
 0x586   :  { %v2448_v10 = vpop.f32.mrb[32].mxu0 }
 0x587   :  { %v2470_v52 = vpop.f32.mrb[28].mxu1  ;;  %v2449_v12 = vpop.f32.mrb[33].mxu0 }
 0x588   :  { %v2471_v13 = vpop.f32.mrb[29].mxu1  ;;  %v2450_v35 = vadd.f32 %v2449_v12, %v2448_v10  ;;  %v2451_v47 = vpop.f32.mrb[34].mxu0 }
 0x589   :  { %v2472_v40 = vadd.f32 %v2471_v13, %v2470_v52  ;;  %v2473_v43 = vpop.f32.mrb[30].mxu1  ;;  %v2452_v1 = vpop.f32.mrb[35].mxu0 }
 0x58a   :  { %v2474_v57 = vpop.f32.mrb[31].mxu1  ;;  %v1964_v6 = vadd.f32 %v2450_v35, %v1924_v46 }
 0x58c   :  { %v2004_v9 = vadd.f32 %v2472_v40, %v1964_v6 }
 0x5a6   :  { %v2492_v11 = vpop.f32.mrb[36].mxu0 }
 0x5a7   :  { %v2514_v48 = vpop.f32.mrb[32].mxu1  ;;  %v2493_v14 = vpop.f32.mrb[37].mxu0 }
 0x5a8   :  { %v2515_v44 = vpop.f32.mrb[33].mxu1  ;;  %v2494_v50 = vadd.f32 %v2493_v14, %v2492_v11  ;;  %v2495_v17 = vpop.f32.mrb[38].mxu0 }
 0x5a9   :  { %v2516_v15 = vadd.f32 %v2515_v44, %v2514_v48  ;;  %v2517_v16 = vpop.f32.mrb[34].mxu1  ;;  %v2496_v20 = vpop.f32.mrb[39].mxu0 }
 0x5aa   :  { %v2518_v19 = vpop.f32.mrb[35].mxu1  ;;  %v2044_v23 = vadd.f32 %v2494_v50, %v2004_v9 }
 0x5ac   :  { %v2084_v18 = vadd.f32 %v2516_v15, %v2044_v23 }
 0x5c6   :  { %v2536_v21 = vpop.f32.mrb[40].mxu0 }
 0x5c7   :  { %v2537_v25 = vpop.f32.mrb[41].mxu0 }
 0x5c8   :  { %v2538_v36 = vadd.f32 %v2537_v25, %v2536_v21  ;;  %v2539_v49 = vpop.f32.mrb[42].mxu0 }
 0x5c9   :  { %v2540_v59 = vpop.f32.mrb[43].mxu0 }
 0x5ca   :  { %v2124_v53 = vadd.f32 %v2538_v36, %v2084_v18 }
 0x5db   :  { %v2163_v62 = vpop.f32.mrb[36].mxu1 }
 0x5dc   :  { %v2164_v24 = vadd.f32 %v2163_v62, %v2124_v53  ;;  %v2165_v34 = vpop.f32.mrb[37].mxu1 }
 0x5dd   :  { %v2166_v26 = vpop.f32.mrb[38].mxu1 }
 0x5de   :  { %2169 = vst [vmem:[#allocation5] sm:$0x7] %v2164_v24  ;;  %v2167_v27 = vpop.f32.mrb[39].mxu1 }
 0x5df   :  { %2698 = shalt.err (!%p2695_p12)
}
 0x5e0   :  { %s2699_s26 = scalar_lea.hbm %s3425_s12, 64 }
 0x5e1   :  { %p2700_p13 = scmp.ne.s32.totalorder %s3425_s12, %s2699_s26  ;;  %p2703_p0 = scmp.lt.u32.totalorder %s2699_s26, %s3425_s12 }
 0x5e3   :  { %p2705_p1 = pnand %p2703_p0, %p2700_p13 }
 0x5e5   :  { %2708 = shalt.err (!%p2705_p1)
}
 0x5e6   :  { %2179 = dma.vmem_to_hbm [thread:$0]  %s2177_s22, 64, %s3425_s12, [#allocation6]  }
 0x5e7   :  { %2713 = dma.done.wait [#allocation6], 64  }
 0x5e8   :  { %2714 = vsyncadd [#allocation6], 4294967232 }
 0x5e9   :  { %2183 = vsyncpa [#allocation6], 1 }
 0x5ea   :  { %2184 = vsyncmov [#allocation4] }
 0x5ed   :  { %s2185_s29 = vpop.sfrf %2184 }
 0x5ee   :  { %p2302_p2 = scmp.ne.s32.totalorder %s2185_s29, 0 }
 0x5f0   :  { %2189 = shalt.err (%p2302_p2)  }
 0x5f1   :  { %2191 = vsyncmov [#allocation4 + $0x1] }
 0x5f4   :  { %s2192_s30 = vpop.sfrf %2191 }
 0x5f5   :  { %p2303_p3 = scmp.ne.s32.totalorder %s2192_s30, 0 }
 0x5f7   :  { %2196 = shalt.err (%p2303_p3)  }

</bundles_post_ra>
